<compile_context>
chip_gen: v5e
topology: v5e:2x2
jax: 0.10.0
libtpu: 0.0.40
codegen_flags: <defaults>
</compile_context>

<pallas_src>
import functools

import jax
import jax.numpy as jnp
from jax.experimental import pallas as pl
from jax.experimental.pallas import tpu as pltpu


# ---------------------------------------------------------------------------
# Generation-aware tiling configuration
# ---------------------------------------------------------------------------
_CFG = {
    # tm: row tile, tn: intermediate (reduction) tile, tv: vocab tile
    "v5e": dict(tm=128, tn=256,  tv=1024, gate_bf16=False, vmem_cap=100 << 20),
    "v6e": dict(tm=256, tn=1024, tv=2048, gate_bf16=True,  vmem_cap=100 << 20),
    "v7x": dict(tm=256, tn=256,  tv=512,  gate_bf16=True,  vmem_cap=48 << 20),
}


def _round_up(x, m):
    return (x + m - 1) // m * m


def _tpu_cfg():
    try:
        kind = jax.devices()[0].device_kind.lower()
    except Exception:
        kind = ""
    if "v7" in kind:
        return _CFG["v7x"]
    if "v5e" in kind or "v5 lite" in kind or "v5lite" in kind:
        return _CFG["v5e"]
    # v6e / v5p / v4 / unknown: 128 MiB-VMEM class parts.
    return _CFG["v6e"]


def _layer_footprint(tm, tn, H, bpe):
    """Approximate VMEM need of one decoder-layer step (streamed blocks are
    double-buffered; scratch counted once; fp32 intermediates + headroom)."""
    streamed = (tm * H * bpe          # x tile
                + 2 * H * tn * bpe    # stacked W1/W3 tile
                + tn * H * bpe        # W2 tile
                + tm * H * bpe)       # output tile
    scratch = tm * H * bpe + tm * H * 4        # normed-h + fp32 accumulator
    interim = 3 * tm * tn * 4                  # a / b / act (fp32 worst case)
    return 2 * streamed + scratch + interim + (2 << 20)


def _head_footprint(tm, tv, H, bpe):
    streamed = tm * H * bpe + H * tv * bpe + tm * tv * bpe
    return 2 * streamed + (2 << 20)


def _pick_row_tile(N, H, cfg, bpe):
    """Row tile: fixed per-generation target, shrunk only if even the smallest
    reduction tile would blow the VMEM cap (very large H on small-VMEM parts)."""
    tm = min(cfg["tm"], _round_up(N, 16))      # 16-row align for bf16 packing
    while tm > 16 and _layer_footprint(tm, 128, H, bpe) > cfg["vmem_cap"]:
        tm = max(16, _round_up(tm // 2, 16))
    return tm


# ---------------------------------------------------------------------------
# Kernels
# ---------------------------------------------------------------------------
def _rms_norm_f32(x, g, eps=1e-6):
    """RMSNorm matching the torch module: fp32 statistics, scale by gamma."""
    xf = x.astype(jnp.float32)
    return xf * jax.lax.rsqrt(jnp.mean(xf * xf, axis=-1, keepdims=True) + eps) * g


def _decoder_body(x_ref, g_ref, gout_ref, w13_ref, w2_ref, o_ref, h_ref, acc_ref,
                  bf16_gate):
    """One MLPDecoderLayer row/column tile:
         h   = RMSNorm(x) * gamma                  (once per row tile, j == 0)
         act = SiLU(h @ W1_j) * (h @ W3_j)         (column tile j of I)
         acc += act @ W2_j                         (reduction over j)
       Optionally fuses the model's FINAL RMSNorm into the writeback."""
    j = pl.program_id(1)
    nj = pl.num_programs(1)

    @pl.when(j == 0)
    def _init():
        h_ref[...] = _rms_norm_f32(x_ref[...], g_ref[...]).astype(h_ref.dtype)
        acc_ref[...] = jnp.zeros_like(acc_ref)

    h = h_ref[...]
    # TODO(synk): a single (tm, 2*tn) MXU push from an (H, 2*tn) concatenated
    # weight tile would save one result-FIFO drain per step; kept as two dots
    # sharing the LHS to avoid coupling the stored weight layout to tn.
    a = jnp.dot(h, w13_ref[0], preferred_element_type=jnp.float32)
    b = jnp.dot(h, w13_ref[1], preferred_element_type=jnp.float32)
    if bf16_gate:                       # v6e / v7x: bf16 VPU + bf16 EUP
        a = a.astype(h.dtype)
        b = b.astype(h.dtype)
    act = (a * jax.nn.sigmoid(a)) * b   # SiLU(a) * b
    acc_ref[...] += jnp.dot(act.astype(h.dtype), w2_ref[...],
                            preferred_element_type=jnp.float32)

    @pl.when(j == nj - 1)
    def _finalize():
        out = acc_ref[...]
        if gout_ref is not None:
            # Final model RMSNorm fused into the last layer's writeback so the
            # lm_head kernel is a pure, fully-parallel matmul.
            out = _rms_norm_f32(out, gout_ref[...])
        o_ref[...] = out.astype(o_ref.dtype)


def decoder_layer_kernel(x_ref, g_ref, w13_ref, w2_ref, o_ref, h_ref, acc_ref,
                         *, bf16_gate):
    _decoder_body(x_ref, g_ref, None, w13_ref, w2_ref, o_ref, h_ref, acc_ref,
                  bf16_gate)


def decoder_layer_norm_out_kernel(x_ref, g_ref, gout_ref, w13_ref, w2_ref, o_ref,
                                  h_ref, acc_ref, *, bf16_gate):
    _decoder_body(x_ref, g_ref, gout_ref, w13_ref, w2_ref, o_ref, h_ref, acc_ref,
                  bf16_gate)


def head_kernel(x_ref, w_ref, o_ref):
    """lm_head projection on already-normed activations, vocab-tiled."""
    o_ref[...] = jnp.dot(x_ref[...], w_ref[...],
                         preferred_element_type=jnp.float32).astype(o_ref.dtype)


# ---------------------------------------------------------------------------
# pallas_call wrappers
# ---------------------------------------------------------------------------
def run_decoder_layer(x, gamma, w13_t, w2_t, *, tm, cfg, out_norm_gamma=None):
    N, H = x.shape
    I = w13_t.shape[-1]
    bpe = jnp.dtype(x.dtype).itemsize
    assert N % tm == 0

    tn = min(cfg["tn"], _round_up(I, 128))
    while tn > 128 and _layer_footprint(tm, tn, H, bpe) > cfg["vmem_cap"]:
        tn = max(128, ((tn // 2) // 128) * 128)

    Ip = _round_up(I, tn)
    if Ip != I:
        # TODO(synk): pre-pad weights once at init time to avoid a per-call pad.
        w13_t = jnp.pad(w13_t, ((0, 0), (0, 0), (0, Ip - I)))
        w2_t = jnp.pad(w2_t, ((0, Ip - I), (0, 0)))

    grid = (N // tm, Ip // tn)
    vmem_limit = int(min(cfg["vmem_cap"],
                         max(32 << 20, _layer_footprint(tm, tn, H, bpe))))

    fuse_out_norm = out_norm_gamma is not None
    kernel = functools.partial(
        decoder_layer_norm_out_kernel if fuse_out_norm else decoder_layer_kernel,
        bf16_gate=cfg["gate_bf16"])

    in_specs = [
        pl.BlockSpec((tm, H), lambda i, j: (i, 0)),          # activations
        pl.BlockSpec((1, H), lambda i, j: (0, 0)),           # ffn_norm gamma
    ]
    args = [x, gamma.reshape(1, H)]
    if fuse_out_norm:
        in_specs.append(pl.BlockSpec((1, H), lambda i, j: (0, 0)))  # final norm gamma
        args.append(out_norm_gamma.reshape(1, H))
    in_specs += [
        pl.BlockSpec((2, H, tn), lambda i, j: (0, 0, j)),    # stacked W1/W3
        pl.BlockSpec((tn, H), lambda i, j: (j, 0)),          # W2
    ]
    args += [w13_t, w2_t]

    return pl.pallas_call(
        kernel,
        out_shape=jax.ShapeDtypeStruct((N, H), x.dtype),
        grid=grid,
        in_specs=in_specs,
        out_specs=pl.BlockSpec((tm, H), lambda i, j: (i, 0)),
        scratch_shapes=[
            pltpu.VMEM((tm, H), x.dtype),        # normed activations (per row tile)
            pltpu.VMEM((tm, H), jnp.float32),    # fp32 accumulator
        ],
        compiler_params=pltpu.CompilerParams(
            dimension_semantics=("parallel", "arbitrary"),
            vmem_limit_bytes=vmem_limit),
    )(*args)


def run_head(x, wlm_t, *, tm, cfg):
    N, H = x.shape
    V = wlm_t.shape[1]
    bpe = jnp.dtype(x.dtype).itemsize
    assert N % tm == 0

    tv = min(cfg["tv"], _round_up(V, 128))
    while tv > 128 and _head_footprint(tm, tv, H, bpe) > cfg["vmem_cap"]:
        tv = max(128, ((tv // 2) // 128) * 128)

    Vp = _round_up(V, tv)
    if Vp != V:
        wlm_t = jnp.pad(wlm_t, ((0, 0), (0, Vp - V)))

    grid = (N // tm, Vp // tv)
    vmem_limit = int(min(cfg["vmem_cap"],
                         max(32 << 20, _head_footprint(tm, tv, H, bpe))))

    out = pl.pallas_call(
        head_kernel,
        out_shape=jax.ShapeDtypeStruct((N, Vp), x.dtype),    # bf16 logits
        grid=grid,
        in_specs=[
            pl.BlockSpec((tm, H), lambda i, j: (i, 0)),      # normed activations
            pl.BlockSpec((H, tv), lambda i, j: (0, j)),      # lm_head column tile
        ],
        out_specs=pl.BlockSpec((tm, tv), lambda i, j: (i, j)),
        compiler_params=pltpu.CompilerParams(
            # Pure matmul, no scratch/accumulator: both axes parallel so megacore
            # parts can also shard the (large) vocab axis.
            dimension_semantics=("parallel", "parallel"),
            vmem_limit_bytes=vmem_limit),
    )(x, wlm_t)
    return out[:, :V] if Vp != V else out


# ---------------------------------------------------------------------------
# Full model forward
# ---------------------------------------------------------------------------
def mlp_for_causal_lm_forward(params, input_ids, labels=None):
    # `labels` accepted to mirror the torch signature; forward returns logits only.
    B, S = input_ids.shape
    cfg = _tpu_cfg()
    H = params["embed"].shape[1]

    # TODO(synk): embedding gather kept in plain JAX (jnp.take); a Pallas
    # row-gather kernel adds no value for this memory-bound lookup.
    hidden = jnp.take(params["embed"], input_ids.reshape(-1), axis=0)   # (N, H) bf16
    N = hidden.shape[0]
    bpe = jnp.dtype(hidden.dtype).itemsize

    tm = _pick_row_tile(N, H, cfg, bpe)
    Np = _round_up(N, tm)
    if Np != N:
        hidden = jnp.pad(hidden, ((0, Np - N), (0, 0)))

    n_layers = len(params["layers"])
    if n_layers == 0:   # degenerate config: final norm cannot be fused anywhere
        hidden = _rms_norm_f32(hidden, params["norm"][None, :]).astype(hidden.dtype)

    # TODO(synk): per-layer pipeline fill/drain is not hidden (no cross-call
    # weight prefetch / fused layer-loop pallas_call yet).
    for li, layer in enumerate(params["layers"]):
        hidden = run_decoder_layer(
            hidden, layer["ffn_norm"], layer["w13_t"], layer["w2_t"],
            tm=tm, cfg=cfg,
            out_norm_gamma=params["norm"] if li == n_layers - 1 else None)

    logits = run_head(hidden, params["lm_head_t"], tm=tm, cfg=cfg)
    if Np != N:
        logits = logits[:N]
    V = logits.shape[-1]
    return logits.reshape(B, S, V)


def init_params(key, vocab_size, hidden_size, intermediate_size, num_layers,
                dtype=jnp.bfloat16):
    # Mirrors init_weights(): Linear/Embedding ~ N(0, 0.02); RMSNorm weights = 1.
    std = 0.02
    keys = jax.random.split(key, 2 + 3 * num_layers)
    embed = std * jax.random.normal(keys[0], (vocab_size, hidden_size), jnp.float32)
    lm_head = std * jax.random.normal(keys[1], (vocab_size, hidden_size), jnp.float32)
    params = {
        "embed": embed.astype(dtype),
        "lm_head_t": lm_head.T.astype(dtype),      # (H, V)
        "norm": jnp.ones((hidden_size,), jnp.float32),
        "layers": [],
    }
    for l in range(num_layers):
        k1, k2, k3 = keys[2 + 3 * l], keys[3 + 3 * l], keys[4 + 3 * l]
        w1 = std * jax.random.normal(k1, (intermediate_size, hidden_size), jnp.float32)
        w2 = std * jax.random.normal(k2, (hidden_size, intermediate_size), jnp.float32)
        w3 = std * jax.random.normal(k3, (intermediate_size, hidden_size), jnp.float32)
        params["layers"].append({
            # stack (W1^T, W3^T) -> (2, H, I): one weight DMA stream, shared LHS
            "w13_t": jnp.stack([w1.T, w3.T], axis=0).astype(dtype),
            "w2_t": w2.T.astype(dtype),            # (I, H)
            "ffn_norm": jnp.ones((hidden_size,), jnp.float32),
        })
    return params


# ---------------------------------------------------------------------------
# Pure-JAX reference (fp32 math on the same bf16-stored params)
# ---------------------------------------------------------------------------
def _ref_forward(params, input_ids):
    def rms(x, g, eps=1e-6):
        ms = jnp.mean(x * x, axis=-1, keepdims=True)
        return x * jax.lax.rsqrt(ms + eps) * g

    h = jnp.take(params["embed"].astype(jnp.float32), input_ids, axis=0)
    for layer in params["layers"]:
        w1t = layer["w13_t"][0].astype(jnp.float32)
        w3t = layer["w13_t"][1].astype(jnp.float32)
        w2t = layer["w2_t"].astype(jnp.float32)
        x = rms(h, layer["ffn_norm"])
        h = (jax.nn.silu(x @ w1t) * (x @ w3t)) @ w2t
    h = rms(h, params["norm"])
    return h @ params["lm_head_t"].astype(jnp.float32)


if __name__ == "__main__":
    # Small, TPU-layout-friendly synthetic config
    VOCAB, HIDDEN, INTER, LAYERS = 256, 128, 256, 2
    BATCH, SEQ = 2, 8

    key = jax.random.PRNGKey(0)
    pkey, ikey, lkey = jax.random.split(key, 3)
    params = init_params(pkey, VOCAB, HIDDEN, INTER, LAYERS)

    input_ids = jax.random.randint(ikey, (BATCH, SEQ), 0, VOCAB, dtype=jnp.int32)
    labels = jax.random.randint(lkey, (BATCH, SEQ), 0, VOCAB, dtype=jnp.int32)  # unused

    forward = jax.jit(mlp_for_causal_lm_forward)
    logits = jax.block_until_ready(forward(params, input_ids, labels))

    ref = _ref_forward(params, input_ids)
    assert logits.shape == (BATCH, SEQ, VOCAB)
    assert jnp.allclose(logits.astype(jnp.float32), ref, atol=2e-2, rtol=2e-2), \
        "mismatch vs pure-JAX reference"

    print("KERNEL_OK")
</pallas_src>

<mosaic_0001>
module attributes {stable_mosaic.version = 11 : i64} {
  func.func @head_kernel(%arg0: i32, %arg1: i32, %arg2: memref<16x128xbf16, #tpu.memory_space<vmem>>, %arg3: memref<128x256xbf16, #tpu.memory_space<vmem>>, %arg4: memref<16x256xbf16, #tpu.memory_space<vmem>>) attributes {dimension_semantics = [#tpu.dimension_semantics<parallel>, #tpu.dimension_semantics<parallel>], iteration_bounds = array<i64: 1, 1>, scalar_prefetch = 0 : i64, scratch_operands = 0 : i64, tpu.core_type = #tpu.core_type<tc>, window_params = [{transform_indices = @transform_0, window_bounds = array<i64: 16, 128>}, {transform_indices = @transform_1, window_bounds = array<i64: 128, 256>}, {transform_indices = @transform_2, window_bounds = array<i64: 16, 256>}]} {
    %c0 = arith.constant 0 : index
    %c0_0 = arith.constant 0 : index
    %0 = vector.load %arg2[%c0, %c0_0] : memref<16x128xbf16, #tpu.memory_space<vmem>>, vector<16x128xbf16>
    %c0_1 = arith.constant 0 : index
    %c0_2 = arith.constant 0 : index
    %1 = vector.load %arg3[%c0_1, %c0_2] : memref<128x256xbf16, #tpu.memory_space<vmem>>, vector<128x256xbf16>
    %cst = arith.constant dense<0.000000e+00> : vector<16x256xf32>
    %2 = tpu.matmul %0, %1, %cst {dimension_numbers = #tpu.dot_dimension_numbers<[1], [0], [0], [1], [0, 0, 1, 1], [], []>} : vector<16x128xbf16>, vector<128x256xbf16>, vector<16x256xf32> -> vector<16x256xf32>
    %3 = arith.truncf %2 : vector<16x256xf32> to vector<16x256xbf16>
    %c0_3 = arith.constant 0 : index
    %c0_4 = arith.constant 0 : index
    %4 = vector.load %arg4[%c0_3, %c0_4] : memref<16x256xbf16, #tpu.memory_space<vmem>>, vector<16x256xbf16>
    tpu.vector_store %arg4[%c0_3, %c0_4], %3 {strides = array<i32>} : memref<16x256xbf16, #tpu.memory_space<vmem>>, vector<16x256xbf16>,
    return
  }
  func.func @transform_0(%arg0: i32, %arg1: i32) -> (i32, i32) {
    %c0_i32 = arith.constant 0 : i32
    %c0_i32_0 = arith.constant 0 : i32
    return %arg0, %c0_i32 : i32, i32
  }
  func.func @transform_1(%arg0: i32, %arg1: i32) -> (i32, i32) {
    %c0_i32 = arith.constant 0 : i32
    %c0_i32_0 = arith.constant 0 : i32
    return %c0_i32, %arg1 : i32, i32
  }
  func.func @transform_2(%arg0: i32, %arg1: i32) -> (i32, i32) {
    %c0_i32 = arith.constant 0 : i32
    return %arg0, %arg1 : i32, i32
  }
}

module attributes {stable_mosaic.version = 11 : i64} {
  func.func @decoder_layer_kernel(%arg0: i32, %arg1: i32, %arg2: memref<16x128xbf16, #tpu.memory_space<vmem>>, %arg3: memref<1x128xf32, #tpu.memory_space<vmem>>, %arg4: memref<2x128x256xbf16, #tpu.memory_space<vmem>>, %arg5: memref<256x128xbf16, #tpu.memory_space<vmem>>, %arg6: memref<16x128xbf16, #tpu.memory_space<vmem>>, %arg7: memref<16x128xbf16, #tpu.memory_space<vmem>>, %arg8: memref<16x128xf32, #tpu.memory_space<vmem>>) attributes {dimension_semantics = [#tpu.dimension_semantics<parallel>, #tpu.dimension_semantics<arbitrary>], iteration_bounds = array<i64: 1, 1>, scalar_prefetch = 0 : i64, scratch_operands = 2 : i64, tpu.core_type = #tpu.core_type<tc>, window_params = [{transform_indices = @transform_0, window_bounds = array<i64: 16, 128>}, {pipeline_mode = #tpu.pipeline_mode<synchronous>, transform_indices = @transform_1, window_bounds = array<i64: 1, 128>}, {transform_indices = @transform_2, window_bounds = array<i64: 2, 128, 256>}, {transform_indices = @transform_3, window_bounds = array<i64: 256, 128>}, {transform_indices = @transform_4, window_bounds = array<i64: 16, 128>}]} {
    %c0_i32 = arith.constant 0 : i32
    %0 = arith.cmpi eq, %arg1, %c0_i32 : i32
    %1 = arith.extui %0 : i1 to i32
    %c0_i32_0 = arith.constant 0 : i32
    %2 = arith.cmpi ne, %1, %c0_i32_0 : i32
    scf.if %2 {
      %c0_18 = arith.constant 0 : index
      %c0_19 = arith.constant 0 : index
      %27 = vector.load %arg2[%c0_18, %c0_19] : memref<16x128xbf16, #tpu.memory_space<vmem>>, vector<16x128xbf16>
      %c0_20 = arith.constant 0 : index
      %c0_21 = arith.constant 0 : index
      %28 = vector.load %arg3[%c0_20, %c0_21] : memref<1x128xf32, #tpu.memory_space<vmem>>, vector<1x128xf32>
      %29 = arith.extf %27 : vector<16x128xbf16> to vector<16x128xf32>
      %30 = arith.mulf %29, %29 : vector<16x128xf32>
      %cst_22 = arith.constant dense<0.000000e+00> : vector<16xf32>
      %31 = vector.multi_reduction <add>, %30, %cst_22 [1] : vector<16x128xf32> to vector<16xf32>
      %32 = vector.shape_cast %31 : vector<16xf32> to vector<16x1xf32>
      %cst_23 = arith.constant 1.280000e+02 : f32
      %33 = vector.broadcast %cst_23 : f32 to vector<16x1xf32>
      %34 = arith.divf %32, %33 : vector<16x1xf32>
      %cst_24 = arith.constant 9.99999997E-7 : f32
      %35 = vector.broadcast %cst_24 : f32 to vector<16x1xf32>
      %36 = arith.addf %34, %35 : vector<16x1xf32>
      %37 = math.rsqrt %36 : vector<16x1xf32>
      %38 = vector.broadcast %37 : vector<16x1xf32> to vector<16x128xf32>
      %39 = arith.mulf %29, %38 : vector<16x128xf32>
      %40 = vector.broadcast %28 : vector<1x128xf32> to vector<16x128xf32>
      %41 = arith.mulf %39, %40 : vector<16x128xf32>
      %42 = arith.truncf %41 : vector<16x128xf32> to vector<16x128xbf16>
      %c0_25 = arith.constant 0 : index
      %c0_26 = arith.constant 0 : index
      %43 = vector.load %arg7[%c0_25, %c0_26] : memref<16x128xbf16, #tpu.memory_space<vmem>>, vector<16x128xbf16>
      tpu.vector_store %arg7[%c0_25, %c0_26], %42 {strides = array<i32>} : memref<16x128xbf16, #tpu.memory_space<vmem>>, vector<16x128xbf16>,
      %cst_27 = arith.constant 0.000000e+00 : f32
      %44 = vector.broadcast %cst_27 : f32 to vector<16x128xf32>
      %c0_28 = arith.constant 0 : index
      %c0_29 = arith.constant 0 : index
      %45 = vector.load %arg8[%c0_28, %c0_29] : memref<16x128xf32, #tpu.memory_space<vmem>>, vector<16x128xf32>
      tpu.vector_store %arg8[%c0_28, %c0_29], %44 {strides = array<i32>} : memref<16x128xf32, #tpu.memory_space<vmem>>, vector<16x128xf32>,
    } else {
    }
    %c0 = arith.constant 0 : index
    %c0_1 = arith.constant 0 : index
    %3 = vector.load %arg7[%c0, %c0_1] : memref<16x128xbf16, #tpu.memory_space<vmem>>, vector<16x128xbf16>
    %c0_2 = arith.constant 0 : index
    %c0_3 = arith.constant 0 : index
    %c0_4 = arith.constant 0 : index
    %4 = vector.load %arg4[%c0_2, %c0_3, %c0_4] : memref<2x128x256xbf16, #tpu.memory_space<vmem>>, vector<1x128x256xbf16>
    %5 = vector.shape_cast %4 : vector<1x128x256xbf16> to vector<128x256xbf16>
    %cst = arith.constant dense<0.000000e+00> : vector<16x256xf32>
    %6 = tpu.matmul %3, %5, %cst {dimension_numbers = #tpu.dot_dimension_numbers<[1], [0], [0], [1], [0, 0, 1, 1], [], []>} : vector<16x128xbf16>, vector<128x256xbf16>, vector<16x256xf32> -> vector<16x256xf32>
    %c1 = arith.constant 1 : index
    %c0_5 = arith.constant 0 : index
    %c0_6 = arith.constant 0 : index
    %7 = vector.load %arg4[%c1, %c0_5, %c0_6] : memref<2x128x256xbf16, #tpu.memory_space<vmem>>, vector<1x128x256xbf16>
    %8 = vector.shape_cast %7 : vector<1x128x256xbf16> to vector<128x256xbf16>
    %cst_7 = arith.constant dense<0.000000e+00> : vector<16x256xf32>
    %9 = tpu.matmul %3, %8, %cst_7 {dimension_numbers = #tpu.dot_dimension_numbers<[1], [0], [0], [1], [0, 0, 1, 1], [], []>} : vector<16x128xbf16>, vector<128x256xbf16>, vector<16x256xf32> -> vector<16x256xf32>
    %10 = arith.truncf %6 : vector<16x256xf32> to vector<16x256xbf16>
    %11 = arith.truncf %9 : vector<16x256xf32> to vector<16x256xbf16>
    %12 = arith.negf %10 : vector<16x256xbf16>
    %13 = math.exp %12 : vector<16x256xbf16>
    %cst_8 = arith.constant 1.000000e+00 : bf16
    %14 = vector.broadcast %cst_8 : bf16 to vector<16x256xbf16>
    %15 = arith.addf %14, %13 : vector<16x256xbf16>
    %16 = arith.divf %14, %15 : vector<16x256xbf16>
    %17 = arith.mulf %10, %16 : vector<16x256xbf16>
    %18 = arith.mulf %17, %11 : vector<16x256xbf16>
    %c0_9 = arith.constant 0 : index
    %c0_10 = arith.constant 0 : index
    %19 = vector.load %arg8[%c0_9, %c0_10] : memref<16x128xf32, #tpu.memory_space<vmem>>, vector<16x128xf32>
    %c0_11 = arith.constant 0 : index
    %c0_12 = arith.constant 0 : index
    %20 = vector.load %arg5[%c0_11, %c0_12] : memref<256x128xbf16, #tpu.memory_space<vmem>>, vector<256x128xbf16>
    %cst_13 = arith.constant dense<0.000000e+00> : vector<16x128xf32>
    %21 = tpu.matmul %18, %20, %cst_13 {dimension_numbers = #tpu.dot_dimension_numbers<[1], [0], [0], [1], [0, 0, 1, 1], [], []>} : vector<16x256xbf16>, vector<256x128xbf16>, vector<16x128xf32> -> vector<16x128xf32>
    %22 = arith.addf %19, %21 : vector<16x128xf32>
    %c0_14 = arith.constant 0 : index
    %c0_15 = arith.constant 0 : index
    %23 = vector.load %arg8[%c0_14, %c0_15] : memref<16x128xf32, #tpu.memory_space<vmem>>, vector<16x128xf32>
    tpu.vector_store %arg8[%c0_14, %c0_15], %22 {strides = array<i32>} : memref<16x128xf32, #tpu.memory_space<vmem>>, vector<16x128xf32>,
    %c0_i32_16 = arith.constant 0 : i32
    %24 = arith.cmpi eq, %arg1, %c0_i32_16 : i32
    %25 = arith.extui %24 : i1 to i32
    %c0_i32_17 = arith.constant 0 : i32
    %26 = arith.cmpi ne, %25, %c0_i32_17 : i32
    scf.if %26 {
      %c0_18 = arith.constant 0 : index
      %c0_19 = arith.constant 0 : index
      %27 = vector.load %arg8[%c0_18, %c0_19] : memref<16x128xf32, #tpu.memory_space<vmem>>, vector<16x128xf32>
      %28 = arith.truncf %27 : vector<16x128xf32> to vector<16x128xbf16>
      %c0_20 = arith.constant 0 : index
      %c0_21 = arith.constant 0 : index
      %29 = vector.load %arg6[%c0_20, %c0_21] : memref<16x128xbf16, #tpu.memory_space<vmem>>, vector<16x128xbf16>
      tpu.vector_store %arg6[%c0_20, %c0_21], %28 {strides = array<i32>} : memref<16x128xbf16, #tpu.memory_space<vmem>>, vector<16x128xbf16>,
    } else {
    }
    return
  }
  func.func @transform_0(%arg0: i32, %arg1: i32) -> (i32, i32) {
    %c0_i32 = arith.constant 0 : i32
    %c0_i32_0 = arith.constant 0 : i32
    return %arg0, %c0_i32 : i32, i32
  }
  func.func @transform_1(%arg0: i32, %arg1: i32) -> (i32, i32) {
    %c0_i32 = arith.constant 0 : i32
    %c0_i32_0 = arith.constant 0 : i32
    %c0_i32_1 = arith.constant 0 : i32
    return %c0_i32, %c0_i32_0 : i32, i32
  }
  func.func @transform_2(%arg0: i32, %arg1: i32) -> (i32, i32, i32) {
    %c0_i32 = arith.constant 0 : i32
    %c0_i32_0 = arith.constant 0 : i32
    %c0_i32_1 = arith.constant 0 : i32
    return %c0_i32, %c0_i32_0, %arg1 : i32, i32, i32
  }
  func.func @transform_3(%arg0: i32, %arg1: i32) -> (i32, i32) {
    %c0_i32 = arith.constant 0 : i32
    %c0_i32_0 = arith.constant 0 : i32
    return %arg1, %c0_i32 : i32, i32
  }
  func.func @transform_4(%arg0: i32, %arg1: i32) -> (i32, i32) {
    %c0_i32 = arith.constant 0 : i32
    %c0_i32_0 = arith.constant 0 : i32
    return %arg0, %c0_i32 : i32, i32
  }
}

module attributes {stable_mosaic.version = 11 : i64} {
  func.func @decoder_layer_norm_out_kernel(%arg0: i32, %arg1: i32, %arg2: memref<16x128xbf16, #tpu.memory_space<vmem>>, %arg3: memref<1x128xf32, #tpu.memory_space<vmem>>, %arg4: memref<1x128xf32, #tpu.memory_space<vmem>>, %arg5: memref<2x128x256xbf16, #tpu.memory_space<vmem>>, %arg6: memref<256x128xbf16, #tpu.memory_space<vmem>>, %arg7: memref<16x128xbf16, #tpu.memory_space<vmem>>, %arg8: memref<16x128xbf16, #tpu.memory_space<vmem>>, %arg9: memref<16x128xf32, #tpu.memory_space<vmem>>) attributes {dimension_semantics = [#tpu.dimension_semantics<parallel>, #tpu.dimension_semantics<arbitrary>], iteration_bounds = array<i64: 1, 1>, scalar_prefetch = 0 : i64, scratch_operands = 2 : i64, tpu.core_type = #tpu.core_type<tc>, window_params = [{transform_indices = @transform_0, window_bounds = array<i64: 16, 128>}, {pipeline_mode = #tpu.pipeline_mode<synchronous>, transform_indices = @transform_1, window_bounds = array<i64: 1, 128>}, {pipeline_mode = #tpu.pipeline_mode<synchronous>, transform_indices = @transform_2, window_bounds = array<i64: 1, 128>}, {transform_indices = @transform_3, window_bounds = array<i64: 2, 128, 256>}, {transform_indices = @transform_4, window_bounds = array<i64: 256, 128>}, {transform_indices = @transform_5, window_bounds = array<i64: 16, 128>}]} {
    %c0_i32 = arith.constant 0 : i32
    %0 = arith.cmpi eq, %arg1, %c0_i32 : i32
    %1 = arith.extui %0 : i1 to i32
    %c0_i32_0 = arith.constant 0 : i32
    %2 = arith.cmpi ne, %1, %c0_i32_0 : i32
    scf.if %2 {
      %c0_18 = arith.constant 0 : index
      %c0_19 = arith.constant 0 : index
      %27 = vector.load %arg2[%c0_18, %c0_19] : memref<16x128xbf16, #tpu.memory_space<vmem>>, vector<16x128xbf16>
      %c0_20 = arith.constant 0 : index
      %c0_21 = arith.constant 0 : index
      %28 = vector.load %arg3[%c0_20, %c0_21] : memref<1x128xf32, #tpu.memory_space<vmem>>, vector<1x128xf32>
      %29 = arith.extf %27 : vector<16x128xbf16> to vector<16x128xf32>
      %30 = arith.mulf %29, %29 : vector<16x128xf32>
      %cst_22 = arith.constant dense<0.000000e+00> : vector<16xf32>
      %31 = vector.multi_reduction <add>, %30, %cst_22 [1] : vector<16x128xf32> to vector<16xf32>
      %32 = vector.shape_cast %31 : vector<16xf32> to vector<16x1xf32>
      %cst_23 = arith.constant 1.280000e+02 : f32
      %33 = vector.broadcast %cst_23 : f32 to vector<16x1xf32>
      %34 = arith.divf %32, %33 : vector<16x1xf32>
      %cst_24 = arith.constant 9.99999997E-7 : f32
      %35 = vector.broadcast %cst_24 : f32 to vector<16x1xf32>
      %36 = arith.addf %34, %35 : vector<16x1xf32>
      %37 = math.rsqrt %36 : vector<16x1xf32>
      %38 = vector.broadcast %37 : vector<16x1xf32> to vector<16x128xf32>
      %39 = arith.mulf %29, %38 : vector<16x128xf32>
      %40 = vector.broadcast %28 : vector<1x128xf32> to vector<16x128xf32>
      %41 = arith.mulf %39, %40 : vector<16x128xf32>
      %42 = arith.truncf %41 : vector<16x128xf32> to vector<16x128xbf16>
      %c0_25 = arith.constant 0 : index
      %c0_26 = arith.constant 0 : index
      %43 = vector.load %arg8[%c0_25, %c0_26] : memref<16x128xbf16, #tpu.memory_space<vmem>>, vector<16x128xbf16>
      tpu.vector_store %arg8[%c0_25, %c0_26], %42 {strides = array<i32>} : memref<16x128xbf16, #tpu.memory_space<vmem>>, vector<16x128xbf16>,
      %cst_27 = arith.constant 0.000000e+00 : f32
      %44 = vector.broadcast %cst_27 : f32 to vector<16x128xf32>
      %c0_28 = arith.constant 0 : index
      %c0_29 = arith.constant 0 : index
      %45 = vector.load %arg9[%c0_28, %c0_29] : memref<16x128xf32, #tpu.memory_space<vmem>>, vector<16x128xf32>
      tpu.vector_store %arg9[%c0_28, %c0_29], %44 {strides = array<i32>} : memref<16x128xf32, #tpu.memory_space<vmem>>, vector<16x128xf32>,
    } else {
    }
    %c0 = arith.constant 0 : index
    %c0_1 = arith.constant 0 : index
    %3 = vector.load %arg8[%c0, %c0_1] : memref<16x128xbf16, #tpu.memory_space<vmem>>, vector<16x128xbf16>
    %c0_2 = arith.constant 0 : index
    %c0_3 = arith.constant 0 : index
    %c0_4 = arith.constant 0 : index
    %4 = vector.load %arg5[%c0_2, %c0_3, %c0_4] : memref<2x128x256xbf16, #tpu.memory_space<vmem>>, vector<1x128x256xbf16>
    %5 = vector.shape_cast %4 : vector<1x128x256xbf16> to vector<128x256xbf16>
    %cst = arith.constant dense<0.000000e+00> : vector<16x256xf32>
    %6 = tpu.matmul %3, %5, %cst {dimension_numbers = #tpu.dot_dimension_numbers<[1], [0], [0], [1], [0, 0, 1, 1], [], []>} : vector<16x128xbf16>, vector<128x256xbf16>, vector<16x256xf32> -> vector<16x256xf32>
    %c1 = arith.constant 1 : index
    %c0_5 = arith.constant 0 : index
    %c0_6 = arith.constant 0 : index
    %7 = vector.load %arg5[%c1, %c0_5, %c0_6] : memref<2x128x256xbf16, #tpu.memory_space<vmem>>, vector<1x128x256xbf16>
    %8 = vector.shape_cast %7 : vector<1x128x256xbf16> to vector<128x256xbf16>
    %cst_7 = arith.constant dense<0.000000e+00> : vector<16x256xf32>
    %9 = tpu.matmul %3, %8, %cst_7 {dimension_numbers = #tpu.dot_dimension_numbers<[1], [0], [0], [1], [0, 0, 1, 1], [], []>} : vector<16x128xbf16>, vector<128x256xbf16>, vector<16x256xf32> -> vector<16x256xf32>
    %10 = arith.truncf %6 : vector<16x256xf32> to vector<16x256xbf16>
    %11 = arith.truncf %9 : vector<16x256xf32> to vector<16x256xbf16>
    %12 = arith.negf %10 : vector<16x256xbf16>
    %13 = math.exp %12 : vector<16x256xbf16>
    %cst_8 = arith.constant 1.000000e+00 : bf16
    %14 = vector.broadcast %cst_8 : bf16 to vector<16x256xbf16>
    %15 = arith.addf %14, %13 : vector<16x256xbf16>
    %16 = arith.divf %14, %15 : vector<16x256xbf16>
    %17 = arith.mulf %10, %16 : vector<16x256xbf16>
    %18 = arith.mulf %17, %11 : vector<16x256xbf16>
    %c0_9 = arith.constant 0 : index
    %c0_10 = arith.constant 0 : index
    %19 = vector.load %arg9[%c0_9, %c0_10] : memref<16x128xf32, #tpu.memory_space<vmem>>, vector<16x128xf32>
    %c0_11 = arith.constant 0 : index
    %c0_12 = arith.constant 0 : index
    %20 = vector.load %arg6[%c0_11, %c0_12] : memref<256x128xbf16, #tpu.memory_space<vmem>>, vector<256x128xbf16>
    %cst_13 = arith.constant dense<0.000000e+00> : vector<16x128xf32>
    %21 = tpu.matmul %18, %20, %cst_13 {dimension_numbers = #tpu.dot_dimension_numbers<[1], [0], [0], [1], [0, 0, 1, 1], [], []>} : vector<16x256xbf16>, vector<256x128xbf16>, vector<16x128xf32> -> vector<16x128xf32>
    %22 = arith.addf %19, %21 : vector<16x128xf32>
    %c0_14 = arith.constant 0 : index
    %c0_15 = arith.constant 0 : index
    %23 = vector.load %arg9[%c0_14, %c0_15] : memref<16x128xf32, #tpu.memory_space<vmem>>, vector<16x128xf32>
    tpu.vector_store %arg9[%c0_14, %c0_15], %22 {strides = array<i32>} : memref<16x128xf32, #tpu.memory_space<vmem>>, vector<16x128xf32>,
    %c0_i32_16 = arith.constant 0 : i32
    %24 = arith.cmpi eq, %arg1, %c0_i32_16 : i32
    %25 = arith.extui %24 : i1 to i32
    %c0_i32_17 = arith.constant 0 : i32
    %26 = arith.cmpi ne, %25, %c0_i32_17 : i32
    scf.if %26 {
      %c0_18 = arith.constant 0 : index
      %c0_19 = arith.constant 0 : index
      %27 = vector.load %arg9[%c0_18, %c0_19] : memref<16x128xf32, #tpu.memory_space<vmem>>, vector<16x128xf32>
      %c0_20 = arith.constant 0 : index
      %c0_21 = arith.constant 0 : index
      %28 = vector.load %arg4[%c0_20, %c0_21] : memref<1x128xf32, #tpu.memory_space<vmem>>, vector<1x128xf32>
      %29 = arith.mulf %27, %27 : vector<16x128xf32>
      %cst_22 = arith.constant dense<0.000000e+00> : vector<16xf32>
      %30 = vector.multi_reduction <add>, %29, %cst_22 [1] : vector<16x128xf32> to vector<16xf32>
      %31 = vector.shape_cast %30 : vector<16xf32> to vector<16x1xf32>
      %cst_23 = arith.constant 1.280000e+02 : f32
      %32 = vector.broadcast %cst_23 : f32 to vector<16x1xf32>
      %33 = arith.divf %31, %32 : vector<16x1xf32>
      %cst_24 = arith.constant 9.99999997E-7 : f32
      %34 = vector.broadcast %cst_24 : f32 to vector<16x1xf32>
      %35 = arith.addf %33, %34 : vector<16x1xf32>
      %36 = math.rsqrt %35 : vector<16x1xf32>
      %37 = vector.broadcast %36 : vector<16x1xf32> to vector<16x128xf32>
      %38 = arith.mulf %27, %37 : vector<16x128xf32>
      %39 = vector.broadcast %28 : vector<1x128xf32> to vector<16x128xf32>
      %40 = arith.mulf %38, %39 : vector<16x128xf32>
      %41 = arith.truncf %40 : vector<16x128xf32> to vector<16x128xbf16>
      %c0_25 = arith.constant 0 : index
      %c0_26 = arith.constant 0 : index
      %42 = vector.load %arg7[%c0_25, %c0_26] : memref<16x128xbf16, #tpu.memory_space<vmem>>, vector<16x128xbf16>
      tpu.vector_store %arg7[%c0_25, %c0_26], %41 {strides = array<i32>} : memref<16x128xbf16, #tpu.memory_space<vmem>>, vector<16x128xbf16>,
    } else {
    }
    return
  }
  func.func @transform_0(%arg0: i32, %arg1: i32) -> (i32, i32) {
    %c0_i32 = arith.constant 0 : i32
    %c0_i32_0 = arith.constant 0 : i32
    return %arg0, %c0_i32 : i32, i32
  }
  func.func @transform_1(%arg0: i32, %arg1: i32) -> (i32, i32) {
    %c0_i32 = arith.constant 0 : i32
    %c0_i32_0 = arith.constant 0 : i32
    %c0_i32_1 = arith.constant 0 : i32
    return %c0_i32, %c0_i32_0 : i32, i32
  }
  func.func @transform_2(%arg0: i32, %arg1: i32) -> (i32, i32) {
    %c0_i32 = arith.constant 0 : i32
    %c0_i32_0 = arith.constant 0 : i32
    %c0_i32_1 = arith.constant 0 : i32
    return %c0_i32, %c0_i32_0 : i32, i32
  }
  func.func @transform_3(%arg0: i32, %arg1: i32) -> (i32, i32, i32) {
    %c0_i32 = arith.constant 0 : i32
    %c0_i32_0 = arith.constant 0 : i32
    %c0_i32_1 = arith.constant 0 : i32
    return %c0_i32, %c0_i32_0, %arg1 : i32, i32, i32
  }
  func.func @transform_4(%arg0: i32, %arg1: i32) -> (i32, i32) {
    %c0_i32 = arith.constant 0 : i32
    %c0_i32_0 = arith.constant 0 : i32
    return %arg1, %c0_i32 : i32, i32
  }
  func.func @transform_5(%arg0: i32, %arg1: i32) -> (i32, i32) {
    %c0_i32 = arith.constant 0 : i32
    %c0_i32_0 = arith.constant 0 : i32
    return %arg0, %c0_i32 : i32, i32
  }
}

</mosaic_0001>

<bundles_post_ra>
// kernel: mlp_for_causal_lm_forward.5
= control target key start
LH: loop header
LB: loop body
LE: loop exit
PB: predicated region body
PF: predicated region fallthrough
CT: control target
= control target key end

     0   :  { %7 = vsyncpa [#allocation3], 0  ;;  %s358_s0 = inlined_call_operand.vmem [shape: bf16[16,128], index: 0, kind: input, shape index: {}]   ;;  %s359_s1 = inlined_call_operand.hbm [shape: bf16[128,256], index: 1, kind: input, shape index: {}]   ;;  %s360_s2 = inlined_call_operand.hbm [shape: bf16[16,256], index: 2, kind: output, shape index: {}]  }
   0x1   :  { %8 = vsyncpa [#allocation4], 0  ;;  %s15_s11 = sshll.u32 %s359_s1, 4  ;;  %s324_s12 = smov [#allocation2]   ;;  %s16_s11 = int_to_ptr.hbm [resolvable:$true] %s15_s11 }
   0x2   :  { %s17_s13 = sshll.u32 %s324_s12, 4  ;;  %s325_s14 = smov 128   ;;  %s18_s13 = int_to_ptr.vmem [resolvable:$true] %s17_s13 }
   0x3   :  { %s326_s15 = smov 8  }
   0x4   :  { %23 = dma.hbm_to_vmem [thread:$0]  %s16_s11, 2048, %s18_s13, [#allocation3], %s325_s14, %s325_s14, %s326_s15  }
   0x5   :  { %320 = dma.done.wait [#allocation3], 2048  }
   0x6   :  { %321 = vsyncadd [#allocation3], 4294965248  ;;  %v245_v0 = vld [vmem:[#allocation2 + $0x70] sm:$0xf]  ;;  %v267_v1 = vld [vmem:[#allocation2 + $0x74] sm:$0xf0] }
   0x7   :  { %v266_v2 = vld [vmem:[#allocation2 + $0x74] sm:$0xf]  ;;  %v246_v3 = vor.u32 %v267_v1, %v245_v0  ;;  %v247_v4 = vld [vmem:[#allocation2 + $0x78] sm:$0xf0]  ;;  %v237_v5 = vld [vmem:[#allocation2 + $0x60] sm:$0xf] }
   0x8   :  { %v265_v6 = vld [vmem:[#allocation2 + $0x64] sm:$0xf0]  ;;  %v250_v7 = vor.u32 %v266_v2, %v247_v4  ;;  %v264_v8 = vld [vmem:[#allocation2 + $0x64] sm:$0xf]  ;;  %v239_v9 = vld [vmem:[#allocation2 + $0x68] sm:$0xf0] }
   0x9   :  { %132 = vmatpush.bf16.msra.mxu0 %v246_v3  ;;  %v238_v10 = vor.u32 %v265_v6, %v237_v5  ;;  %v242_v11 = vor.u32 %v264_v8, %v239_v9  ;;  %v229_v12 = vld [vmem:[#allocation2 + $0x50] sm:$0xf]  ;;  %v263_v13 = vld [vmem:[#allocation2 + $0x54] sm:$0xf0]  ;;  %v262_v14 = vld [vmem:[#allocation2 + $0x54] sm:$0xf] }
   0xa   :  { %146 = vmatpush.bf16.msra.mxu1 %v250_v7  ;;  %v231_v15 = vld [vmem:[#allocation2 + $0x58] sm:$0xf0]  ;;  %v230_v16 = vor.u32 %v263_v13, %v229_v12  ;;  %v221_v18 = vld [vmem:[#allocation2 + $0x40] sm:$0xf]  ;;  %v261_v19 = vld [vmem:[#allocation2 + $0x44] sm:$0xf0] }
   0xb   :  { %v234_v17 = vor.u32 %v262_v14, %v231_v15  ;;  %v260_v20 = vld [vmem:[#allocation2 + $0x44] sm:$0xf]  ;;  %v223_v21 = vld [vmem:[#allocation2 + $0x48] sm:$0xf0]  ;;  %v222_v22 = vor.u32 %v261_v19, %v221_v18  ;;  %v213_v24 = vld [vmem:[#allocation2 + $0x30] sm:$0xf] }
   0xc   :  { %v226_v23 = vor.u32 %v260_v20, %v223_v21  ;;  %v259_v25 = vld [vmem:[#allocation2 + $0x34] sm:$0xf0]  ;;  %v258_v26 = vld [vmem:[#allocation2 + $0x34] sm:$0xf]  ;;  %v215_v27 = vld [vmem:[#allocation2 + $0x38] sm:$0xf0] }
   0xd   :  { %133 = vmatpush.bf16.msra.mxu0 %v238_v10  ;;  %v214_v28 = vor.u32 %v259_v25, %v213_v24  ;;  %v218_v29 = vor.u32 %v258_v26, %v215_v27  ;;  %v205_v30 = vld [vmem:[#allocation2 + $0x20] sm:$0xf]  ;;  %v257_v31 = vld [vmem:[#allocation2 + $0x24] sm:$0xf0]  ;;  %v256_v32 = vld [vmem:[#allocation2 + $0x24] sm:$0xf] }
   0xe   :  { %147 = vmatpush.bf16.msra.mxu1 %v242_v11  ;;  %v207_v33 = vld [vmem:[#allocation2 + $0x28] sm:$0xf0]  ;;  %v206_v34 = vor.u32 %v257_v31, %v205_v30  ;;  %v197_v36 = vld [vmem:[#allocation2 + $0x10] sm:$0xf]  ;;  %v255_v37 = vld [vmem:[#allocation2 + $0x14] sm:$0xf0] }
   0xf   :  { %v210_v35 = vor.u32 %v256_v32, %v207_v33  ;;  %v254_v38 = vld [vmem:[#allocation2 + $0x14] sm:$0xf]  ;;  %v199_v39 = vld [vmem:[#allocation2 + $0x18] sm:$0xf0]  ;;  %v198_v40 = vor.u32 %v255_v37, %v197_v36  ;;  %v189_v42 = vld [vmem:[#allocation2] sm:$0xf] }
  0x10   :  { %v202_v41 = vor.u32 %v254_v38, %v199_v39  ;;  %v253_v43 = vld [vmem:[#allocation2 + $0x4] sm:$0xf0]  ;;  %v252_v44 = vld [vmem:[#allocation2 + $0x4] sm:$0xf]  ;;  %v191_v45 = vld [vmem:[#allocation2 + $0x8] sm:$0xf0] }
  0x11   :  { %134 = vmatpush.bf16.msra.mxu0 %v230_v16  ;;  %v190_v46 = vor.u32 %v253_v43, %v189_v42  ;;  %v194_v47 = vor.u32 %v252_v44, %v191_v45  ;;  %v251_v48 = vld [vmem:[%s358_s0] sm:$0xff]  ;;  %s327_s17 = smov [#allocation5]   ;;  %s170_s21 = sshll.u32 %s360_s2, 4  ;;  %s171_s21 = int_to_ptr.hbm [resolvable:$true] %s170_s21 }
  0x12   :  { %148 = vmatpush.bf16.msra.mxu1 %v234_v17  ;;  %s168_s18 = sshll.u32 %s327_s17, 4  ;;  %s169_s18 = int_to_ptr.vmem [resolvable:$true] %s168_s18 }
  0x15   :  { %135 = vmatpush.bf16.msra.mxu0 %v222_v22 }
  0x16   :  { %149 = vmatpush.bf16.msra.mxu1 %v226_v23 }
  0x19   :  { %136 = vmatpush.bf16.msra.mxu0 %v214_v28 }
  0x1a   :  { %150 = vmatpush.bf16.msra.mxu1 %v218_v29 }
  0x1d   :  { %137 = vmatpush.bf16.msra.mxu0 %v206_v34 }
  0x1e   :  { %151 = vmatpush.bf16.msra.mxu1 %v210_v35 }
  0x21   :  { %138 = vmatpush.bf16.msra.mxu0 %v198_v40 }
  0x22   :  { %152 = vmatpush.bf16.msra.mxu1 %v202_v41 }
  0x25   :  { %139 = vmatpush.bf16.msra.mxu0 %v190_v46 }
  0x26   :  { %153 = vmatpush.bf16.msra.mxu1 %v194_v47 }
  0x28   :  { %140 = vmatmul.bf16.vlgmr.msra.gmra.mxu0 %v251_v48 }
  0x29   :  { %154 = vmatmul.bf16.vlgmr.msra.gmra.mxu1 %v251_v48 }
  0xa5   :  { %v141_v49 = vpop.f32.mrf.mxu0 }
  0xa6   :  { %v155_v50 = vpop.f32.mrf.mxu1 }
  0xa7   :  { %v160_v51 = vpack.c.bf16 %v155_v50, %v141_v49 }
  0xa9   :  { %162 = vst [vmem:[#allocation5] sm:$0xff] %v160_v51 }
  0xad   :  { %v143_v52 = vpop.f32.mrf.mxu0 }
  0xae   :  { %v157_v53 = vpop.f32.mrf.mxu1 }
  0xaf   :  { %v161_v54 = vpack.c.bf16 %v157_v53, %v143_v52 }
  0xb1   :  { %163 = vst [vmem:[#allocation5 + $0x8] sm:$0xff] %v161_v54 }
  0xb2   :  { %176 = dma.vmem_to_hbm [thread:$0]  %s169_s18, 256, %s171_s21, [#allocation4], %s325_s14, %s325_s14, %s326_s15  }
  0xb3   :  { %322 = dma.done.wait [#allocation4], 256  }
  0xb4   :  { %323 = vsyncadd [#allocation4], 4294967040 }
  0xb5   :  { %181 = vsyncpa [#allocation3], 1 }
  0xb6   :  { %182 = vsyncpa [#allocation4], 1 }

// kernel: mlp_for_causal_lm_forward.3
= control target key start
LH: loop header
LB: loop body
LE: loop exit
PB: predicated region body
PF: predicated region fallthrough
CT: control target
= control target key end

     0   :  { %9 = vsyncpa [#allocation5], 0  ;;  %s1034_s0 = inlined_call_operand.vmem [shape: bf16[16,128], index: 0, kind: input, shape index: {}]   ;;  %s1035_s1 = inlined_call_operand.vmem [shape: f32[1,128], index: 1, kind: input, shape index: {}]   ;;  %s1036_s2 = inlined_call_operand.hbm [shape: bf16[2,128,256], index: 2, kind: input, shape index: {}]   ;;  %s1037_s3 = inlined_call_operand.hbm [shape: bf16[256,128], index: 3, kind: input, shape index: {}]   ;;  %s1038_s4 = inlined_call_operand.vmem [shape: bf16[16,128], index: 4, kind: output, shape index: {}]  }
   0x1   :  { %s19_s17 = sshll.u32 %s1036_s2, 4  ;;  %s20_s17 = int_to_ptr.hbm [resolvable:$true] %s19_s17 }
   0x2   :  { %10 = vsyncpa [#allocation7], 0  ;;  %s959_s18 = smov [#allocation4]   ;;  %s32_s22 = sshll.u32 %s1037_s3, 4  ;;  %s33_s22 = int_to_ptr.hbm [resolvable:$true] %s32_s22 }
   0x3   :  { %s21_s19 = sshll.u32 %s959_s18, 4  ;;  %s960_s23 = smov 128   ;;  %s22_s19 = int_to_ptr.vmem [resolvable:$true] %s21_s19 }
   0x4   :  { %s961_s24 = smov 8   ;;  %s962_s25 = smov [#allocation6]  }
   0x5   :  { %27 = dma.hbm_to_vmem [thread:$0]  %s20_s17, 4096, %s22_s19, [#allocation5], %s960_s23, %s960_s23, %s961_s24  }
   0x6   :  { %s34_s26 = sshll.u32 %s962_s25, 4  ;;  %s963_s27 = smov 64   ;;  %s35_s26 = int_to_ptr.vmem [resolvable:$true] %s34_s26 }
   0x7   :  { %s964_s28 = smov 4  }
   0x8   :  { %40 = dma.hbm_to_vmem [thread:$0]  %s33_s22, 2048, %s35_s26, [#allocation7], %s963_s27, %s963_s27, %s964_s28  }
   0x9   :  { %955 = dma.done.wait [#allocation5], 4096  }
   0xa   :  { %956 = vsyncadd [#allocation5], 4294963200 }
   0xb   :  { %957 = dma.done.wait [#allocation7], 2048  }
   0xc   :  { %958 = vsyncadd [#allocation7], 4294965248  ;;  %v863_v0 = vld [vmem:[%s1034_s0] sm:$0xff]   ;;  %v965_v5 = vmov 128.0   ;;  %v679_v7 = vld [vmem:[#allocation4 + $0x70] sm:$0xf] }
   0xd   :  { %v1001_v1 = vunpack.c.l.bf16 %v863_v0  ;;  %v1005_v3 = vunpack.c.h.bf16 %v863_v0  ;;  %885 = vrcp.f32 %v965_v5  ;;  %v829_v8 = vld [vmem:[#allocation4 + $0x74] sm:$0xf0]  ;;  %v828_v9 = vld [vmem:[#allocation4 + $0x74] sm:$0xf]  ;;  %v681_v11 = vld [vmem:[#allocation4 + $0x78] sm:$0xf0] }
   0xe   :  { %v680_v10 = vor.u32 %v829_v8, %v679_v7  ;;  %v743_v12 = vld [vmem:[#allocation4 + $0xf0] sm:$0xf]  ;;  %v845_v13 = vld [vmem:[#allocation4 + $0xf4] sm:$0xf0]  ;;  %v684_v15 = vor.u32 %v828_v9, %v681_v11  ;;  %v844_v17 = vld [vmem:[#allocation4 + $0xf4] sm:$0xf] }
   0xf   :  { %v59_v2 = vmul.f32 %v1001_v1, %v1001_v1  ;;  %v60_v4 = vmul.f32 %v1005_v3, %v1005_v3  ;;  %v744_v16 = vor.u32 %v845_v13, %v743_v12  ;;  %v745_v18 = vld [vmem:[#allocation4 + $0xf8] sm:$0xf0]  ;;  %v671_v20 = vld [vmem:[#allocation4 + $0x60] sm:$0xf]  ;;  %v827_v21 = vld [vmem:[#allocation4 + $0x64] sm:$0xf0] }
  0x10   :  { %213 = vmatpush.bf16.msra.mxu0 %v680_v10  ;;  %v748_v19 = vor.u32 %v844_v17, %v745_v18  ;;  %227 = vmatpush.bf16.msra.mxu1 %v684_v15  ;;  %v826_v22 = vld [vmem:[#allocation4 + $0x64] sm:$0xf]  ;;  %v672_v23 = vor.u32 %v827_v21, %v671_v20  ;;  %v673_v24 = vld [vmem:[#allocation4 + $0x68] sm:$0xf0]  ;;  %v735_v25 = vld [vmem:[#allocation4 + $0xe0] sm:$0xf] }
  0x11   :  { %61 = vadd.xlane.f32.xlu0 %v59_v2  ;;  %338 = vmatpush.bf16.msra.mxu2 %v744_v16  ;;  %v843_v26 = vld [vmem:[#allocation4 + $0xe4] sm:$0xf0]  ;;  %v676_v28 = vor.u32 %v826_v22, %v673_v24  ;;  %v842_v30 = vld [vmem:[#allocation4 + $0xe4] sm:$0xf]  ;;  %v737_v31 = vld [vmem:[#allocation4 + $0xe8] sm:$0xf0] }
  0x12   :  { %352 = vmatpush.bf16.msra.mxu3 %v748_v19  ;;  %v736_v29 = vor.u32 %v843_v26, %v735_v25  ;;  %v740_v32 = vor.u32 %v842_v30, %v737_v31  ;;  %v663_v33 = vld [vmem:[#allocation4 + $0x50] sm:$0xf]  ;;  %v825_v34 = vld [vmem:[#allocation4 + $0x54] sm:$0xf0]  ;;  %v824_v35 = vld [vmem:[#allocation4 + $0x54] sm:$0xf] }
  0x13   :  { %v1009_v6 = vpop.eup %885  ;;  %v664_v36 = vor.u32 %v825_v34, %v663_v33  ;;  %v665_v37 = vld [vmem:[#allocation4 + $0x58] sm:$0xf0]  ;;  %v727_v38 = vld [vmem:[#allocation4 + $0xd0] sm:$0xf]  ;;  %v841_v39 = vld [vmem:[#allocation4 + $0xd4] sm:$0xf0] }
  0x14   :  { %v66_v14 = vmul.f32 128.0, %v1009_v6  ;;  %214 = vmatpush.bf16.msra.mxu0 %v672_v23  ;;  %228 = vmatpush.bf16.msra.mxu1 %v676_v28  ;;  %v668_v41 = vor.u32 %v824_v35, %v665_v37  ;;  %v728_v42 = vor.u32 %v841_v39, %v727_v38  ;;  %v840_v43 = vld [vmem:[#allocation4 + $0xd4] sm:$0xf]  ;;  %v729_v44 = vld [vmem:[#allocation4 + $0xd8] sm:$0xf0]  ;;  %vm70_vm0 = vweird.f32 %v1009_v6 }
  0x15   :  { %339 = vmatpush.bf16.msra.mxu2 %v736_v29  ;;  %v732_v45 = vor.u32 %v840_v43, %v729_v44  ;;  %v655_v46 = vld [vmem:[#allocation4 + $0x40] sm:$0xf]  ;;  %v823_v47 = vld [vmem:[#allocation4 + $0x44] sm:$0xf0]  ;;  %v822_v48 = vld [vmem:[#allocation4 + $0x44] sm:$0xf] }
  0x16   :  { %v67_v27 = vsub.f32 1.0, %v66_v14  ;;  %353 = vmatpush.bf16.msra.mxu3 %v740_v32  ;;  %v656_v49 = vor.u32 %v823_v47, %v655_v46  ;;  %v657_v50 = vld [vmem:[#allocation4 + $0x48] sm:$0xf0]  ;;  %v719_v51 = vld [vmem:[#allocation4 + $0xc0] sm:$0xf] }
  0x17   :  { %v839_v52 = vld [vmem:[#allocation4 + $0xc4] sm:$0xf0]  ;;  %v660_v54 = vor.u32 %v822_v48, %v657_v50  ;;  %v838_v56 = vld [vmem:[#allocation4 + $0xc4] sm:$0xf]  ;;  %v721_v57 = vld [vmem:[#allocation4 + $0xc8] sm:$0xf0] }
  0x18   :  { %v68_v40 = vmul.f32 %v1009_v6, %v67_v27  ;;  %215 = vmatpush.bf16.msra.mxu0 %v664_v36  ;;  %229 = vmatpush.bf16.msra.mxu1 %v668_v41  ;;  %v720_v55 = vor.u32 %v839_v52, %v719_v51  ;;  %v724_v58 = vor.u32 %v838_v56, %v721_v57  ;;  %v647_v59 = vld [vmem:[#allocation4 + $0x30] sm:$0xf]  ;;  %v821_v60 = vld [vmem:[#allocation4 + $0x34] sm:$0xf0]  ;;  %v820_v61 = vld [vmem:[#allocation4 + $0x34] sm:$0xf] }
  0x19   :  { %63 = vadd.xlane.f32.xlu0 %v60_v4  ;;  %340 = vmatpush.bf16.msra.mxu2 %v728_v42  ;;  %v648_v62 = vor.u32 %v821_v60, %v647_v59  ;;  %v649_v63 = vld [vmem:[#allocation4 + $0x38] sm:$0xf0]  ;;  %v711_v0 = vld [vmem:[#allocation4 + $0xb0] sm:$0xf]  ;;  %v837_v2 = vld [vmem:[#allocation4 + $0xb4] sm:$0xf0] }
  0x1a   :  { %354 = vmatpush.bf16.msra.mxu3 %v732_v45  ;;  %v69_v53 = vadd.f32 %v1009_v6, %v68_v40  ;;  %v652_v5 = vor.u32 %v820_v61, %v649_v63  ;;  %v712_v7 = vor.u32 %v837_v2, %v711_v0  ;;  %v836_v8 = vld [vmem:[#allocation4 + $0xb4] sm:$0xf]  ;;  %v713_v9 = vld [vmem:[#allocation4 + $0xb8] sm:$0xf0]  ;;  %v639_v12 = vld [vmem:[#allocation4 + $0x20] sm:$0xf] }
  0x1b   :  { %v716_v10 = vor.u32 %v836_v8, %v713_v9  ;;  %v819_v13 = vld [vmem:[#allocation4 + $0x24] sm:$0xf0]  ;;  %v818_v14 = vld [vmem:[#allocation4 + $0x24] sm:$0xf]  ;;  %v641_v17 = vld [vmem:[#allocation4 + $0x28] sm:$0xf0] }
  0x1c   :  { %216 = vmatpush.bf16.msra.mxu0 %v656_v49  ;;  %230 = vmatpush.bf16.msra.mxu1 %v660_v54  ;;  %v71_v4 = vsel %vm70_vm0, %v1009_v6, %v69_v53  ;;  %v640_v16 = vor.u32 %v819_v13, %v639_v12  ;;  %v703_v18 = vld [vmem:[#allocation4 + $0xa0] sm:$0xf]  ;;  %v835_v19 = vld [vmem:[#allocation4 + $0xa4] sm:$0xf0]  ;;  %v644_v20 = vor.u32 %v818_v14, %v641_v17  ;;  %v834_v21 = vld [vmem:[#allocation4 + $0xa4] sm:$0xf] }
  0x1d   :  { %341 = vmatpush.bf16.msra.mxu2 %v720_v55  ;;  %v704_v6 = vor.u32 %v835_v19, %v703_v18  ;;  %v705_v22 = vld [vmem:[#allocation4 + $0xa8] sm:$0xf0]  ;;  %v631_v25 = vld [vmem:[#allocation4 + $0x10] sm:$0xf]  ;;  %v817_v26 = vld [vmem:[#allocation4 + $0x14] sm:$0xf0] }
  0x1e   :  { %355 = vmatpush.bf16.msra.mxu3 %v724_v58  ;;  %v708_v24 = vor.u32 %v834_v21, %v705_v22  ;;  %v816_v27 = vld [vmem:[#allocation4 + $0x14] sm:$0xf]  ;;  %v632_v28 = vor.u32 %v817_v26, %v631_v25  ;;  %v633_v29 = vld [vmem:[#allocation4 + $0x18] sm:$0xf0]  ;;  %v695_v30 = vld [vmem:[#allocation4 + $0x90] sm:$0xf] }
  0x1f   :  { %v833_v31 = vld [vmem:[#allocation4 + $0x94] sm:$0xf0]  ;;  %v636_v32 = vor.u32 %v816_v27, %v633_v29  ;;  %v832_v34 = vld [vmem:[#allocation4 + $0x94] sm:$0xf]  ;;  %v697_v35 = vld [vmem:[#allocation4 + $0x98] sm:$0xf0] }
  0x20   :  { %217 = vmatpush.bf16.msra.mxu0 %v648_v62  ;;  %231 = vmatpush.bf16.msra.mxu1 %v652_v5  ;;  %v696_v33 = vor.u32 %v833_v31, %v695_v30  ;;  %v623_v36 = vld [vmem:[#allocation4] sm:$0xf]  ;;  %v700_v37 = vor.u32 %v832_v34, %v697_v35  ;;  %v815_v38 = vld [vmem:[#allocation4 + $0x4] sm:$0xf0]  ;;  %v814_v39 = vld [vmem:[#allocation4 + $0x4] sm:$0xf] }
  0x21   :  { %342 = vmatpush.bf16.msra.mxu2 %v712_v7  ;;  %v625_v40 = vld [vmem:[#allocation4 + $0x8] sm:$0xf0]  ;;  %v624_v42 = vor.u32 %v815_v38, %v623_v36  ;;  %v687_v44 = vld [vmem:[#allocation4 + $0x80] sm:$0xf]  ;;  %v831_v45 = vld [vmem:[#allocation4 + $0x84] sm:$0xf0] }
  0x22   :  { %356 = vmatpush.bf16.msra.mxu3 %v716_v10  ;;  %v628_v43 = vor.u32 %v814_v39, %v625_v40  ;;  %v830_v46 = vld [vmem:[#allocation4 + $0x84] sm:$0xf]  ;;  %v688_v48 = vor.u32 %v831_v45, %v687_v44  ;;  %v689_v49 = vld [vmem:[#allocation4 + $0x88] sm:$0xf0]  ;;  %v884_v2 = vld [vmem:[%s1035_s1] ss:$0 sm:$0xff] }
  0x23   :  { %v692_v50 = vor.u32 %v830_v46, %v689_v49  ;;  %v853_v12 = vld [vmem:[#allocation6 + $0x38] sm:$0xff]  ;;  %v852_v14 = vld [vmem:[#allocation6 + $0x30] sm:$0xff]  ;;  %v851_v17 = vld [vmem:[#allocation6 + $0x28] sm:$0xff] }
  0x24   :  { %218 = vmatpush.bf16.msra.mxu0 %v640_v16  ;;  %232 = vmatpush.bf16.msra.mxu1 %v644_v20  ;;  %v861_v13 = vld [vmem:[#allocation6 + $0x78] sm:$0xff]  ;;  %v859_v18 = vld [vmem:[#allocation6 + $0x68] sm:$0xff]  ;;  %v850_v21 = vld [vmem:[#allocation6 + $0x20] sm:$0xff] }
  0x25   :  { %343 = vmatpush.bf16.msra.mxu2 %v704_v6  ;;  %v858_v22 = vld [vmem:[#allocation6 + $0x60] sm:$0xff]  ;;  %v857_v29 = vld [vmem:[#allocation6 + $0x58] sm:$0xff]  ;;  %v856_v34 = vld [vmem:[#allocation6 + $0x50] sm:$0xff] }
  0x26   :  { %357 = vmatpush.bf16.msra.mxu3 %v708_v24  ;;  %v847_v40 = vld [vmem:[#allocation6 + $0x8] sm:$0xff]  ;;  %v846_v46 = vld [vmem:[#allocation6] sm:$0xff] }
  0x28   :  { %219 = vmatpush.bf16.msra.mxu0 %v632_v28  ;;  %233 = vmatpush.bf16.msra.mxu1 %v636_v32  ;;  %v849_v28 = vld [vmem:[#allocation6 + $0x18] sm:$0xff] }
  0x29   :  { %344 = vmatpush.bf16.msra.mxu2 %v696_v33  ;;  %v848_v33 = vld [vmem:[#allocation6 + $0x10] sm:$0xff] }
  0x2a   :  { %358 = vmatpush.bf16.msra.mxu3 %v700_v37 }
  0x2c   :  { %220 = vmatpush.bf16.msra.mxu0 %v624_v42  ;;  %234 = vmatpush.bf16.msra.mxu1 %v628_v43 }
  0x2d   :  { %345 = vmatpush.bf16.msra.mxu2 %v688_v48 }
  0x2e   :  { %359 = vmatpush.bf16.msra.mxu3 %v692_v50 }
  0x30   :  { %570 = vmatpush.bf16.msrb.mxu0 %v853_v12  ;;  %584 = vmatpush.bf16.msrb.mxu1 %v861_v13 }
  0x34   :  { %571 = vmatpush.bf16.msrb.mxu0 %v852_v14 }
  0x38   :  { %572 = vmatpush.bf16.msrb.mxu0 %v851_v17 }
  0x3c   :  { %573 = vmatpush.bf16.msrb.mxu0 %v850_v21 }
  0x40   :  { %574 = vmatpush.bf16.msrb.mxu0 %v849_v28 }
  0x44   :  { %575 = vmatpush.bf16.msrb.mxu0 %v848_v33 }
  0x48   :  { %576 = vmatpush.bf16.msrb.mxu0 %v847_v40 }
  0x4c   :  { %577 = vmatpush.bf16.msrb.mxu0 %v846_v46 }
  0x84   :  { %v62_v11 = vpop.xlane.xlu0 %61 }
  0x85   :  { %v72_v15 = vmul.f32 %v71_v4, %v62_v11 }
  0x87   :  { %v74_v23 = vadd.f32 1e-06, %v72_v15  ;;  %v860_v15 = vld [vmem:[#allocation6 + $0x70] sm:$0xff] }
  0x88   :  { %585 = vmatpush.bf16.msrb.mxu1 %v860_v15 }
  0x89   :  { %887 = vrsqrt.f32 %v74_v23  ;;  %vm82_vm2 = vweird.f32 %v74_v23 }
  0x8c   :  { %v64_v41 = vpop.xlane.xlu0 %63  ;;  %586 = vmatpush.bf16.msrb.mxu1 %v859_v18 }
  0x8d   :  { %v73_v47 = vmul.f32 %v71_v4, %v64_v41  ;;  %v855_v41 = vld [vmem:[#allocation6 + $0x48] sm:$0xff] }
  0x8f   :  { %v888_v51 = vpop.eup %887  ;;  %v75_v52 = vadd.f32 1e-06, %v73_v47  ;;  %v854_v47 = vld [vmem:[#allocation6 + $0x40] sm:$0xff] }
  0x90   :  { %v77_v53 = vmul.f32 %v888_v51, %v74_v23  ;;  %vm83_vm1 = vweird.f32 %v888_v51  ;;  %587 = vmatpush.bf16.msrb.mxu1 %v858_v22 }
  0x91   :  { %889 = vrsqrt.f32 %v75_v52  ;;  %vm84_vm3 = vmor %vm82_vm2, %vm83_vm1  ;;  %vm92_vm5 = vweird.f32 %v75_v52 }
  0x92   :  { %v78_v54 = vmul.f32 %v888_v51, %v77_v53 }
  0x94   :  { %v79_v55 = vmul.f32 0.5, %v78_v54  ;;  %588 = vmatpush.bf16.msrb.mxu1 %v857_v29 }
  0x96   :  { %v80_v56 = vsub.f32 1.5, %v79_v55 }
  0x97   :  { %v890_v57 = vpop.eup %889 }
  0x98   :  { %v87_v58 = vmul.f32 %v890_v57, %v75_v52  ;;  %v81_v59 = vmul.f32 %v888_v51, %v80_v56  ;;  %vm93_vm4 = vweird.f32 %v890_v57  ;;  %589 = vmatpush.bf16.msrb.mxu1 %v856_v34 }
  0x99   :  { %vm94_vm6 = vmor %vm92_vm5, %vm93_vm4 }
  0x9a   :  { %v88_v60 = vmul.f32 %v890_v57, %v87_v58  ;;  %v85_v62 = vsel %vm84_vm3, %v888_v51, %v81_v59  ;;  %v966_v58 = vmov 1065369472  }
  0x9b   :  { %v96_v4 = vmul.f32 %v1001_v1, %v85_v62  ;;  %v396_v59 = vunpack.c.h.bf16 %v966_v58 }
  0x9c   :  { %v89_v61 = vmul.f32 0.5, %v88_v60  ;;  %590 = vmatpush.bf16.msrb.mxu1 %v855_v41  ;;  %v397_v60 = vunpack.c.l.bf16 %v966_v58 }
  0x9d   :  { %v101_v8 = vmul.f32 %v884_v2, %v96_v4 }
  0x9e   :  { %v90_v63 = vsub.f32 1.5, %v89_v61 }
  0xa0   :  { %v91_v0 = vmul.f32 %v890_v57, %v90_v63  ;;  %591 = vmatpush.bf16.msrb.mxu1 %v854_v47 }
  0xa2   :  { %v95_v5 = vsel %vm94_vm6, %v890_v57, %v91_v0 }
  0xa3   :  { %v97_v7 = vmul.f32 %v1005_v3, %v95_v5 }
  0xa5   :  { %v102_v9 = vmul.f32 %v884_v2, %v97_v7 }
  0xa7   :  { %v869_v10 = vpack.c.bf16 %v102_v9, %v101_v8 }
  0xa9   :  { %870 = vst [vmem:[#allocation2] sm:$0xff] %v869_v10  }
  0xb0   :  { %v813_v11 = vld [vmem:[#allocation2] sm:$0xff] }
  0xb1   :  { %221 = vmatmul.bf16.vlgmr.msra.gmra.mxu0 %v813_v11  ;;  %235 = vmatmul.bf16.vlgmr.msra.gmra.mxu1 %v813_v11 }
  0xb2   :  { %346 = vmatmul.bf16.vlgmr.msra.gmra.mxu2 %v813_v11  ;;  %360 = vmatmul.bf16.vlgmr.msra.gmra.mxu3 %v813_v11 }
 0x12e   :  { %v222_v1 = vpop.f32.mrf.mxu0  ;;  %v236_v16 = vpop.f32.mrf.mxu1 }
 0x12f   :  { %v1021_v3 = vpack.c.bf16 %v236_v16, %v222_v1 }
 0x131   :  { %v370_v19 = vxor.u32 2147516416, %v1021_v3  ;;  %v412_v13 = vunpack.c.l.bf16 %v1021_v3  ;;  %v413_v14 = vunpack.c.h.bf16 %v1021_v3 }
 0x133   :  { %v372_v20 = vunpack.c.l.bf16 %v370_v19  ;;  %v373_v6 = vunpack.c.h.bf16 %v370_v19 }
 0x135   :  { %v376_v23 = vmul.f32 1.442695, %v372_v20  ;;  %v378_v24 = vmul.f32 1.442695, %v373_v6  ;;  %v347_v7 = vpop.f32.mrf.mxu2  ;;  %v361_v8 = vpop.f32.mrf.mxu3 }
 0x136   :  { %v224_v25 = vpop.f32.mrf.mxu0  ;;  %v238_v26 = vpop.f32.mrf.mxu1 }
 0x137   :  { %891 = vpow2.f32 %v376_v23  ;;  %v1024_v27 = vpack.c.bf16 %v238_v26, %v224_v25  ;;  %v368_v26 = vpack.c.bf16 %v361_v8, %v347_v7 }
 0x138   :  { %893 = vpow2.f32 %v378_v24 }
 0x139   :  { %v371_v30 = vxor.u32 2147516416, %v1024_v27  ;;  %v414_v20 = vunpack.c.l.bf16 %v1024_v27  ;;  %v415_v23 = vunpack.c.h.bf16 %v1024_v27  ;;  %v430_v33 = vunpack.c.l.bf16 %v368_v26 }
 0x13a   :  { %v431_v34 = vunpack.c.h.bf16 %v368_v26 }
 0x13b   :  { %v374_v31 = vunpack.c.l.bf16 %v371_v30  ;;  %v375_v32 = vunpack.c.h.bf16 %v371_v30 }
 0x13d   :  { %v892_v35 = vpop.eup %891  ;;  %v380_v36 = vmul.f32 1.442695, %v374_v31  ;;  %v382_v37 = vmul.f32 1.442695, %v375_v32  ;;  %v349_v6 = vpop.f32.mrf.mxu2 }
 0x13e   :  { %v894_v38 = vpop.eup %893  ;;  %v363_v21 = vpop.f32.mrf.mxu3 }
 0x13f   :  { %v384_v39 = vpack.c.bf16 %v894_v38, %v892_v35  ;;  %895 = vpow2.f32 %v380_v36  ;;  %v369_v30 = vpack.c.bf16 %v363_v21, %v349_v6 }
 0x140   :  { %897 = vpow2.f32 %v382_v37 }
 0x141   :  { %v386_v42 = vunpack.c.l.bf16 %v384_v39  ;;  %v387_v43 = vunpack.c.h.bf16 %v384_v39  ;;  %v432_v37 = vunpack.c.l.bf16 %v369_v30  ;;  %v433_v38 = vunpack.c.h.bf16 %v369_v30 }
 0x143   :  { %v390_v44 = vadd.f32 1.0, %v386_v42  ;;  %v391_v45 = vadd.f32 1.0, %v387_v43 }
 0x145   :  { %v896_v48 = vpop.eup %895  ;;  %v394_v49 = vpack.c.bf16 %v391_v45, %v390_v44 }
 0x146   :  { %v898_v50 = vpop.eup %897 }
 0x147   :  { %v398_v51 = vunpack.c.h.bf16 %v394_v49  ;;  %v399_v52 = vunpack.c.l.bf16 %v394_v49  ;;  %v385_v53 = vpack.c.bf16 %v898_v50, %v896_v48 }
 0x149   :  { %899 = vrcp.f32 %v398_v51  ;;  %v388_v54 = vunpack.c.l.bf16 %v385_v53  ;;  %v389_v55 = vunpack.c.h.bf16 %v385_v53 }
 0x14a   :  { %901 = vrcp.f32 %v399_v52 }
 0x14b   :  { %v392_v56 = vadd.f32 1.0, %v388_v54  ;;  %v393_v57 = vadd.f32 1.0, %v389_v55 }
 0x14d   :  { %v395_v61 = vpack.c.bf16 %v393_v57, %v392_v56 }
 0x14f   :  { %v900_v62 = vpop.eup %899  ;;  %v405_v63 = vunpack.c.h.bf16 %v395_v61  ;;  %v406_v0 = vunpack.c.l.bf16 %v395_v61 }
 0x150   :  { %v902_v2 = vpop.eup %901  ;;  %v401_v4 = vmul.f32 %v900_v62, %v396_v59 }
 0x151   :  { %v403_v5 = vmul.f32 %v902_v2, %v397_v60  ;;  %903 = vrcp.f32 %v405_v63 }
 0x152   :  { %905 = vrcp.f32 %v406_v0 }
 0x153   :  { %v404_v9 = vpack.c.bf16 %v401_v4, %v403_v5 }
 0x155   :  { %v416_v10 = vunpack.c.l.bf16 %v404_v9  ;;  %v417_v11 = vunpack.c.h.bf16 %v404_v9 }
 0x157   :  { %v904_v12 = vpop.eup %903  ;;  %v420_v16 = vmul.f32 %v416_v10, %v412_v13  ;;  %v421_v17 = vmul.f32 %v417_v11, %v413_v14 }
 0x158   :  { %v906_v15 = vpop.eup %905  ;;  %v408_v1 = vmul.f32 %v904_v12, %v396_v59 }
 0x159   :  { %v410_v18 = vmul.f32 %v906_v15, %v397_v60  ;;  %v424_v22 = vpack.c.bf16 %v421_v17, %v420_v16 }
 0x15b   :  { %v411_v19 = vpack.c.bf16 %v408_v1, %v410_v18  ;;  %v426_v3 = vunpack.c.l.bf16 %v424_v22  ;;  %v427_v31 = vunpack.c.h.bf16 %v424_v22 }
 0x15d   :  { %v418_v24 = vunpack.c.l.bf16 %v411_v19  ;;  %v419_v25 = vunpack.c.h.bf16 %v411_v19  ;;  %v434_v39 = vmul.f32 %v430_v33, %v426_v3  ;;  %v435_v40 = vmul.f32 %v431_v34, %v427_v31 }
 0x15f   :  { %v422_v28 = vmul.f32 %v418_v24, %v414_v20  ;;  %v423_v29 = vmul.f32 %v419_v25, %v415_v23 }
 0x161   :  { %v425_v32 = vpack.c.bf16 %v423_v29, %v422_v28 }
 0x163   :  { %v428_v35 = vunpack.c.l.bf16 %v425_v32  ;;  %v429_v36 = vunpack.c.h.bf16 %v425_v32 }
 0x165   :  { %v436_v41 = vmul.f32 %v432_v37, %v428_v35  ;;  %v437_v42 = vmul.f32 %v433_v38, %v429_v36 }
 0x167   :  { %v438_v27 = vpack.c.bf16 %v436_v41, %v434_v39  ;;  %v439_v43 = vpack.c.bf16 %v437_v42, %v435_v40 }
 0x169   :  { %578 = vmatmul.bf16.vlgmr.msrb.gmra.mxu0 %v438_v27  ;;  %592 = vmatmul.bf16.vlgmr.msrb.gmra.mxu1 %v439_v43 }
 0x1e6   :  { %v579_v44 = vpop.f32.mrf.mxu0  ;;  %v593_v45 = vpop.f32.mrf.mxu1 }
 0x1e7   :  { %v594_v48 = vadd.f32 %v593_v45, %v579_v44 }
 0x1ee   :  { %v581_v46 = vpop.f32.mrf.mxu0  ;;  %v595_v47 = vpop.f32.mrf.mxu1 }
 0x1ef   :  { %v596_v49 = vadd.f32 %v595_v47, %v581_v46 }
 0x1f1   :  { %v874_v50 = vpack.c.bf16 %v596_v49, %v594_v48 }
 0x1f3   :  { %875 = vst [vmem:[%s1038_s4] sm:$0xff] %v874_v50  }
 0x1f4   :  { %615 = vsyncpa [#allocation5], 1 }
 0x1f5   :  { %616 = vsyncpa [#allocation7], 1 }

// kernel: mlp_for_causal_lm_forward.4
= control target key start
LH: loop header
LB: loop body
LE: loop exit
PB: predicated region body
PF: predicated region fallthrough
CT: control target
= control target key end

     0   :  { %10 = vsyncpa [#allocation5], 0  ;;  %s1101_s0 = inlined_call_operand.vmem [shape: bf16[16,128], index: 0, kind: input, shape index: {}]   ;;  %s1102_s1 = inlined_call_operand.vmem [shape: f32[1,128], index: 1, kind: input, shape index: {}]   ;;  %s1103_s2 = inlined_call_operand.vmem [shape: f32[1,128], index: 2, kind: input, shape index: {}]   ;;  %s1104_s3 = inlined_call_operand.hbm [shape: bf16[2,128,256], index: 3, kind: input, shape index: {}]   ;;  %s1105_s4 = inlined_call_operand.hbm [shape: bf16[256,128], index: 4, kind: input, shape index: {}]   ;;  %s1106_s5 = inlined_call_operand.vmem [shape: bf16[16,128], index: 5, kind: output, shape index: {}]  }
   0x1   :  { %s22_s20 = sshll.u32 %s1104_s3, 4  ;;  %s23_s20 = int_to_ptr.hbm [resolvable:$true] %s22_s20 }
   0x2   :  { %11 = vsyncpa [#allocation7], 0  ;;  %s1012_s21 = smov [#allocation4]   ;;  %s35_s25 = sshll.u32 %s1105_s4, 4  ;;  %s36_s25 = int_to_ptr.hbm [resolvable:$true] %s35_s25 }
   0x3   :  { %s24_s22 = sshll.u32 %s1012_s21, 4  ;;  %s1013_s26 = smov 128   ;;  %s25_s22 = int_to_ptr.vmem [resolvable:$true] %s24_s22 }
   0x4   :  { %s1014_s27 = smov 8   ;;  %s1015_s28 = smov [#allocation6]  }
   0x5   :  { %30 = dma.hbm_to_vmem [thread:$0]  %s23_s20, 4096, %s25_s22, [#allocation5], %s1013_s26, %s1013_s26, %s1014_s27  }
   0x6   :  { %s37_s29 = sshll.u32 %s1015_s28, 4  ;;  %s1016_s30 = smov 64   ;;  %s38_s29 = int_to_ptr.vmem [resolvable:$true] %s37_s29 }
   0x7   :  { %s1017_s6 = smov 4  }
   0x8   :  { %43 = dma.hbm_to_vmem [thread:$0]  %s36_s25, 2048, %s38_s29, [#allocation7], %s1016_s30, %s1016_s30, %s1017_s6  }
   0x9   :  { %1008 = dma.done.wait [#allocation5], 4096  }
   0xa   :  { %1009 = vsyncadd [#allocation5], 4294963200 }
   0xb   :  { %1010 = dma.done.wait [#allocation7], 2048  }
   0xc   :  { %1011 = vsyncadd [#allocation7], 4294965248  ;;  %v911_v0 = vld [vmem:[%s1101_s0] sm:$0xff]   ;;  %v1018_v5 = vmov 128.0   ;;  %v727_v7 = vld [vmem:[#allocation4 + $0x70] sm:$0xf] }
   0xd   :  { %v1059_v1 = vunpack.c.l.bf16 %v911_v0  ;;  %v1063_v3 = vunpack.c.h.bf16 %v911_v0  ;;  %934 = vrcp.f32 %v1018_v5  ;;  %v877_v8 = vld [vmem:[#allocation4 + $0x74] sm:$0xf0]  ;;  %v876_v9 = vld [vmem:[#allocation4 + $0x74] sm:$0xf]  ;;  %v729_v11 = vld [vmem:[#allocation4 + $0x78] sm:$0xf0] }
   0xe   :  { %v728_v10 = vor.u32 %v877_v8, %v727_v7  ;;  %v791_v12 = vld [vmem:[#allocation4 + $0xf0] sm:$0xf]  ;;  %v893_v13 = vld [vmem:[#allocation4 + $0xf4] sm:$0xf0]  ;;  %v732_v15 = vor.u32 %v876_v9, %v729_v11  ;;  %v892_v17 = vld [vmem:[#allocation4 + $0xf4] sm:$0xf] }
   0xf   :  { %v62_v2 = vmul.f32 %v1059_v1, %v1059_v1  ;;  %v63_v4 = vmul.f32 %v1063_v3, %v1063_v3  ;;  %v792_v16 = vor.u32 %v893_v13, %v791_v12  ;;  %v793_v18 = vld [vmem:[#allocation4 + $0xf8] sm:$0xf0]  ;;  %v719_v20 = vld [vmem:[#allocation4 + $0x60] sm:$0xf]  ;;  %v875_v21 = vld [vmem:[#allocation4 + $0x64] sm:$0xf0] }
  0x10   :  { %216 = vmatpush.bf16.msra.mxu0 %v728_v10  ;;  %v796_v19 = vor.u32 %v892_v17, %v793_v18  ;;  %230 = vmatpush.bf16.msra.mxu1 %v732_v15  ;;  %v874_v22 = vld [vmem:[#allocation4 + $0x64] sm:$0xf]  ;;  %v720_v23 = vor.u32 %v875_v21, %v719_v20  ;;  %v721_v24 = vld [vmem:[#allocation4 + $0x68] sm:$0xf0]  ;;  %v783_v25 = vld [vmem:[#allocation4 + $0xe0] sm:$0xf] }
  0x11   :  { %64 = vadd.xlane.f32.xlu0 %v62_v2  ;;  %341 = vmatpush.bf16.msra.mxu2 %v792_v16  ;;  %v891_v26 = vld [vmem:[#allocation4 + $0xe4] sm:$0xf0]  ;;  %v724_v28 = vor.u32 %v874_v22, %v721_v24  ;;  %v890_v30 = vld [vmem:[#allocation4 + $0xe4] sm:$0xf]  ;;  %v785_v31 = vld [vmem:[#allocation4 + $0xe8] sm:$0xf0] }
  0x12   :  { %355 = vmatpush.bf16.msra.mxu3 %v796_v19  ;;  %v784_v29 = vor.u32 %v891_v26, %v783_v25  ;;  %v788_v32 = vor.u32 %v890_v30, %v785_v31  ;;  %v711_v33 = vld [vmem:[#allocation4 + $0x50] sm:$0xf]  ;;  %v873_v34 = vld [vmem:[#allocation4 + $0x54] sm:$0xf0]  ;;  %v872_v35 = vld [vmem:[#allocation4 + $0x54] sm:$0xf] }
  0x13   :  { %v1067_v6 = vpop.eup %934  ;;  %v712_v36 = vor.u32 %v873_v34, %v711_v33  ;;  %v713_v37 = vld [vmem:[#allocation4 + $0x58] sm:$0xf0]  ;;  %v775_v38 = vld [vmem:[#allocation4 + $0xd0] sm:$0xf]  ;;  %v889_v39 = vld [vmem:[#allocation4 + $0xd4] sm:$0xf0] }
  0x14   :  { %v69_v14 = vmul.f32 128.0, %v1067_v6  ;;  %217 = vmatpush.bf16.msra.mxu0 %v720_v23  ;;  %231 = vmatpush.bf16.msra.mxu1 %v724_v28  ;;  %v716_v41 = vor.u32 %v872_v35, %v713_v37  ;;  %v776_v42 = vor.u32 %v889_v39, %v775_v38  ;;  %v888_v43 = vld [vmem:[#allocation4 + $0xd4] sm:$0xf]  ;;  %v777_v44 = vld [vmem:[#allocation4 + $0xd8] sm:$0xf0]  ;;  %vm73_vm0 = vweird.f32 %v1067_v6 }
  0x15   :  { %342 = vmatpush.bf16.msra.mxu2 %v784_v29  ;;  %v780_v45 = vor.u32 %v888_v43, %v777_v44  ;;  %v703_v46 = vld [vmem:[#allocation4 + $0x40] sm:$0xf]  ;;  %v871_v47 = vld [vmem:[#allocation4 + $0x44] sm:$0xf0]  ;;  %v870_v48 = vld [vmem:[#allocation4 + $0x44] sm:$0xf] }
  0x16   :  { %v70_v27 = vsub.f32 1.0, %v69_v14  ;;  %356 = vmatpush.bf16.msra.mxu3 %v788_v32  ;;  %v704_v49 = vor.u32 %v871_v47, %v703_v46  ;;  %v705_v50 = vld [vmem:[#allocation4 + $0x48] sm:$0xf0]  ;;  %v767_v51 = vld [vmem:[#allocation4 + $0xc0] sm:$0xf] }
  0x17   :  { %v887_v52 = vld [vmem:[#allocation4 + $0xc4] sm:$0xf0]  ;;  %v708_v54 = vor.u32 %v870_v48, %v705_v50  ;;  %v886_v56 = vld [vmem:[#allocation4 + $0xc4] sm:$0xf]  ;;  %v769_v57 = vld [vmem:[#allocation4 + $0xc8] sm:$0xf0] }
  0x18   :  { %v71_v40 = vmul.f32 %v1067_v6, %v70_v27  ;;  %218 = vmatpush.bf16.msra.mxu0 %v712_v36  ;;  %232 = vmatpush.bf16.msra.mxu1 %v716_v41  ;;  %v768_v55 = vor.u32 %v887_v52, %v767_v51  ;;  %v772_v58 = vor.u32 %v886_v56, %v769_v57  ;;  %v695_v59 = vld [vmem:[#allocation4 + $0x30] sm:$0xf]  ;;  %v869_v60 = vld [vmem:[#allocation4 + $0x34] sm:$0xf0]  ;;  %v868_v61 = vld [vmem:[#allocation4 + $0x34] sm:$0xf] }
  0x19   :  { %66 = vadd.xlane.f32.xlu0 %v63_v4  ;;  %343 = vmatpush.bf16.msra.mxu2 %v776_v42  ;;  %v696_v62 = vor.u32 %v869_v60, %v695_v59  ;;  %v697_v63 = vld [vmem:[#allocation4 + $0x38] sm:$0xf0]  ;;  %v759_v0 = vld [vmem:[#allocation4 + $0xb0] sm:$0xf]  ;;  %v885_v2 = vld [vmem:[#allocation4 + $0xb4] sm:$0xf0] }
  0x1a   :  { %357 = vmatpush.bf16.msra.mxu3 %v780_v45  ;;  %v72_v53 = vadd.f32 %v1067_v6, %v71_v40  ;;  %v700_v5 = vor.u32 %v868_v61, %v697_v63  ;;  %v760_v7 = vor.u32 %v885_v2, %v759_v0  ;;  %v884_v8 = vld [vmem:[#allocation4 + $0xb4] sm:$0xf]  ;;  %v761_v9 = vld [vmem:[#allocation4 + $0xb8] sm:$0xf0]  ;;  %v687_v12 = vld [vmem:[#allocation4 + $0x20] sm:$0xf] }
  0x1b   :  { %v764_v10 = vor.u32 %v884_v8, %v761_v9  ;;  %v867_v13 = vld [vmem:[#allocation4 + $0x24] sm:$0xf0]  ;;  %v866_v14 = vld [vmem:[#allocation4 + $0x24] sm:$0xf]  ;;  %v689_v17 = vld [vmem:[#allocation4 + $0x28] sm:$0xf0] }
  0x1c   :  { %219 = vmatpush.bf16.msra.mxu0 %v704_v49  ;;  %233 = vmatpush.bf16.msra.mxu1 %v708_v54  ;;  %v1074_v4 = vsel %vm73_vm0, %v1067_v6, %v72_v53  ;;  %v688_v16 = vor.u32 %v867_v13, %v687_v12  ;;  %v751_v18 = vld [vmem:[#allocation4 + $0xa0] sm:$0xf]  ;;  %v883_v6 = vld [vmem:[#allocation4 + $0xa4] sm:$0xf0]  ;;  %v692_v19 = vor.u32 %v866_v14, %v689_v17  ;;  %v882_v21 = vld [vmem:[#allocation4 + $0xa4] sm:$0xf] }
  0x1d   :  { %344 = vmatpush.bf16.msra.mxu2 %v768_v55  ;;  %v752_v20 = vor.u32 %v883_v6, %v751_v18  ;;  %v753_v22 = vld [vmem:[#allocation4 + $0xa8] sm:$0xf0]  ;;  %v679_v25 = vld [vmem:[#allocation4 + $0x10] sm:$0xf]  ;;  %v865_v26 = vld [vmem:[#allocation4 + $0x14] sm:$0xf0] }
  0x1e   :  { %358 = vmatpush.bf16.msra.mxu3 %v772_v58  ;;  %v756_v24 = vor.u32 %v882_v21, %v753_v22  ;;  %v864_v27 = vld [vmem:[#allocation4 + $0x14] sm:$0xf]  ;;  %v680_v28 = vor.u32 %v865_v26, %v679_v25  ;;  %v681_v29 = vld [vmem:[#allocation4 + $0x18] sm:$0xf0]  ;;  %v743_v30 = vld [vmem:[#allocation4 + $0x90] sm:$0xf] }
  0x1f   :  { %v881_v31 = vld [vmem:[#allocation4 + $0x94] sm:$0xf0]  ;;  %v684_v32 = vor.u32 %v864_v27, %v681_v29  ;;  %v880_v34 = vld [vmem:[#allocation4 + $0x94] sm:$0xf]  ;;  %v745_v35 = vld [vmem:[#allocation4 + $0x98] sm:$0xf0] }
  0x20   :  { %220 = vmatpush.bf16.msra.mxu0 %v696_v62  ;;  %234 = vmatpush.bf16.msra.mxu1 %v700_v5  ;;  %v744_v33 = vor.u32 %v881_v31, %v743_v30  ;;  %v671_v36 = vld [vmem:[#allocation4] sm:$0xf]  ;;  %v748_v37 = vor.u32 %v880_v34, %v745_v35  ;;  %v863_v38 = vld [vmem:[#allocation4 + $0x4] sm:$0xf0]  ;;  %v862_v39 = vld [vmem:[#allocation4 + $0x4] sm:$0xf] }
  0x21   :  { %345 = vmatpush.bf16.msra.mxu2 %v760_v7  ;;  %v673_v40 = vld [vmem:[#allocation4 + $0x8] sm:$0xf0]  ;;  %v672_v42 = vor.u32 %v863_v38, %v671_v36  ;;  %v735_v44 = vld [vmem:[#allocation4 + $0x80] sm:$0xf]  ;;  %v879_v45 = vld [vmem:[#allocation4 + $0x84] sm:$0xf0] }
  0x22   :  { %359 = vmatpush.bf16.msra.mxu3 %v764_v10  ;;  %v676_v43 = vor.u32 %v862_v39, %v673_v40  ;;  %v878_v46 = vld [vmem:[#allocation4 + $0x84] sm:$0xf]  ;;  %v736_v48 = vor.u32 %v879_v45, %v735_v44  ;;  %v737_v49 = vld [vmem:[#allocation4 + $0x88] sm:$0xf0]  ;;  %v932_v2 = vld [vmem:[%s1102_s1] ss:$0 sm:$0xff] }
  0x23   :  { %v740_v50 = vor.u32 %v878_v46, %v737_v49  ;;  %v901_v13 = vld [vmem:[#allocation6 + $0x38] sm:$0xff]  ;;  %v899_v18 = vld [vmem:[#allocation6 + $0x28] sm:$0xff]  ;;  %v898_v22 = vld [vmem:[#allocation6 + $0x20] sm:$0xff] }
  0x24   :  { %221 = vmatpush.bf16.msra.mxu0 %v688_v16  ;;  %235 = vmatpush.bf16.msra.mxu1 %v692_v19  ;;  %v909_v14 = vld [vmem:[#allocation6 + $0x78] sm:$0xff]  ;;  %v908_v16 = vld [vmem:[#allocation6 + $0x70] sm:$0xff]  ;;  %v907_v6 = vld [vmem:[#allocation6 + $0x68] sm:$0xff] }
  0x25   :  { %346 = vmatpush.bf16.msra.mxu2 %v752_v20  ;;  %v897_v29 = vld [vmem:[#allocation6 + $0x18] sm:$0xff]  ;;  %v896_v34 = vld [vmem:[#allocation6 + $0x10] sm:$0xff] }
  0x26   :  { %360 = vmatpush.bf16.msra.mxu3 %v756_v24  ;;  %v905_v30 = vld [vmem:[#allocation6 + $0x58] sm:$0xff]  ;;  %v904_v35 = vld [vmem:[#allocation6 + $0x50] sm:$0xff] }
  0x28   :  { %222 = vmatpush.bf16.msra.mxu0 %v680_v28  ;;  %236 = vmatpush.bf16.msra.mxu1 %v684_v32 }
  0x29   :  { %347 = vmatpush.bf16.msra.mxu2 %v744_v33 }
  0x2a   :  { %361 = vmatpush.bf16.msra.mxu3 %v748_v37 }
  0x2c   :  { %223 = vmatpush.bf16.msra.mxu0 %v672_v42  ;;  %237 = vmatpush.bf16.msra.mxu1 %v676_v43  ;;  %v903_v42 = vld [vmem:[#allocation6 + $0x48] sm:$0xff] }
  0x2d   :  { %348 = vmatpush.bf16.msra.mxu2 %v736_v48  ;;  %v902_v48 = vld [vmem:[#allocation6 + $0x40] sm:$0xff] }
  0x2e   :  { %362 = vmatpush.bf16.msra.mxu3 %v740_v50 }
  0x30   :  { %573 = vmatpush.bf16.msrb.mxu0 %v901_v13  ;;  %587 = vmatpush.bf16.msrb.mxu1 %v909_v14 }
  0x34   :  { %588 = vmatpush.bf16.msrb.mxu1 %v908_v16 }
  0x38   :  { %589 = vmatpush.bf16.msrb.mxu1 %v907_v6 }
  0x84   :  { %v65_v11 = vpop.xlane.xlu0 %64 }
  0x85   :  { %v75_v15 = vmul.f32 %v1074_v4, %v65_v11 }
  0x87   :  { %v77_v23 = vadd.f32 1e-06, %v75_v15  ;;  %v900_v15 = vld [vmem:[#allocation6 + $0x30] sm:$0xff] }
  0x88   :  { %574 = vmatpush.bf16.msrb.mxu0 %v900_v15 }
  0x89   :  { %936 = vrsqrt.f32 %v77_v23  ;;  %vm85_vm2 = vweird.f32 %v77_v23 }
  0x8c   :  { %v67_v41 = vpop.xlane.xlu0 %66  ;;  %575 = vmatpush.bf16.msrb.mxu0 %v899_v18 }
  0x8d   :  { %v76_v47 = vmul.f32 %v1074_v4, %v67_v41  ;;  %v895_v41 = vld [vmem:[#allocation6 + $0x8] sm:$0xff] }
  0x8f   :  { %v937_v51 = vpop.eup %936  ;;  %v78_v52 = vadd.f32 1e-06, %v76_v47  ;;  %v894_v47 = vld [vmem:[#allocation6] sm:$0xff] }
  0x90   :  { %v80_v53 = vmul.f32 %v937_v51, %v77_v23  ;;  %vm86_vm1 = vweird.f32 %v937_v51  ;;  %v906_v23 = vld [vmem:[#allocation6 + $0x60] sm:$0xff]  ;;  %576 = vmatpush.bf16.msrb.mxu0 %v898_v22 }
  0x91   :  { %938 = vrsqrt.f32 %v78_v52  ;;  %vm87_vm3 = vmor %vm85_vm2, %vm86_vm1  ;;  %vm95_vm5 = vweird.f32 %v78_v52  ;;  %590 = vmatpush.bf16.msrb.mxu1 %v906_v23 }
  0x92   :  { %v81_v54 = vmul.f32 %v937_v51, %v80_v53 }
  0x94   :  { %v82_v55 = vmul.f32 0.5, %v81_v54  ;;  %577 = vmatpush.bf16.msrb.mxu0 %v897_v29 }
  0x95   :  { %591 = vmatpush.bf16.msrb.mxu1 %v905_v30 }
  0x96   :  { %v83_v56 = vsub.f32 1.5, %v82_v55 }
  0x97   :  { %v939_v57 = vpop.eup %938 }
  0x98   :  { %v90_v58 = vmul.f32 %v939_v57, %v78_v52  ;;  %v84_v59 = vmul.f32 %v937_v51, %v83_v56  ;;  %vm96_vm4 = vweird.f32 %v939_v57  ;;  %578 = vmatpush.bf16.msrb.mxu0 %v896_v34 }
  0x99   :  { %vm97_vm6 = vmor %vm95_vm5, %vm96_vm4  ;;  %592 = vmatpush.bf16.msrb.mxu1 %v904_v35 }
  0x9a   :  { %v91_v60 = vmul.f32 %v939_v57, %v90_v58  ;;  %v88_v62 = vsel %vm87_vm3, %v937_v51, %v84_v59  ;;  %v1019_v59 = vmov 1065369472  }
  0x9b   :  { %v99_v5 = vmul.f32 %v1059_v1, %v88_v62 }
  0x9c   :  { %v92_v61 = vmul.f32 0.5, %v91_v60  ;;  %579 = vmatpush.bf16.msrb.mxu0 %v895_v41  ;;  %v399_v60 = vunpack.c.h.bf16 %v1019_v59 }
  0x9d   :  { %v104_v9 = vmul.f32 %v932_v2, %v99_v5  ;;  %593 = vmatpush.bf16.msrb.mxu1 %v903_v42 }
  0x9e   :  { %v93_v63 = vsub.f32 1.5, %v92_v61  ;;  %v400_v61 = vunpack.c.l.bf16 %v1019_v59 }
  0xa0   :  { %v94_v0 = vmul.f32 %v939_v57, %v93_v63  ;;  %580 = vmatpush.bf16.msrb.mxu0 %v894_v47 }
  0xa1   :  { %594 = vmatpush.bf16.msrb.mxu1 %v902_v48 }
  0xa2   :  { %v98_v7 = vsel %vm97_vm6, %v939_v57, %v94_v0 }
  0xa3   :  { %v100_v8 = vmul.f32 %v1063_v3, %v98_v7 }
  0xa5   :  { %v105_v10 = vmul.f32 %v932_v2, %v100_v8 }
  0xa7   :  { %v917_v11 = vpack.c.bf16 %v105_v10, %v104_v9 }
  0xa9   :  { %918 = vst [vmem:[#allocation2] sm:$0xff] %v917_v11  }
  0xb0   :  { %v861_v12 = vld [vmem:[#allocation2] sm:$0xff] }
  0xb1   :  { %224 = vmatmul.bf16.vlgmr.msra.gmra.mxu0 %v861_v12  ;;  %238 = vmatmul.bf16.vlgmr.msra.gmra.mxu1 %v861_v12 }
  0xb2   :  { %349 = vmatmul.bf16.vlgmr.msra.gmra.mxu2 %v861_v12  ;;  %363 = vmatmul.bf16.vlgmr.msra.gmra.mxu3 %v861_v12 }
 0x12e   :  { %v225_v1 = vpop.f32.mrf.mxu0  ;;  %v239_v17 = vpop.f32.mrf.mxu1 }
 0x12f   :  { %v1083_v3 = vpack.c.bf16 %v239_v17, %v225_v1 }
 0x131   :  { %v373_v19 = vxor.u32 2147516416, %v1083_v3  ;;  %v415_v15 = vunpack.c.l.bf16 %v1083_v3  ;;  %v416_v16 = vunpack.c.h.bf16 %v1083_v3 }
 0x133   :  { %v375_v20 = vunpack.c.l.bf16 %v373_v19  ;;  %v376_v21 = vunpack.c.h.bf16 %v373_v19 }
 0x135   :  { %v379_v24 = vmul.f32 1.442695, %v375_v20  ;;  %v381_v25 = vmul.f32 1.442695, %v376_v21  ;;  %v350_v9 = vpop.f32.mrf.mxu2  ;;  %v364_v10 = vpop.f32.mrf.mxu3 }
 0x136   :  { %v227_v26 = vpop.f32.mrf.mxu0  ;;  %v241_v27 = vpop.f32.mrf.mxu1  ;;  %v371_v29 = vpack.c.bf16 %v364_v10, %v350_v9 }
 0x137   :  { %940 = vpow2.f32 %v379_v24  ;;  %v1086_v28 = vpack.c.bf16 %v241_v27, %v227_v26 }
 0x138   :  { %942 = vpow2.f32 %v381_v25  ;;  %v433_v35 = vunpack.c.l.bf16 %v371_v29 }
 0x139   :  { %v374_v31 = vxor.u32 2147516416, %v1086_v28  ;;  %v417_v21 = vunpack.c.l.bf16 %v1086_v28  ;;  %v418_v25 = vunpack.c.h.bf16 %v1086_v28 }
 0x13b   :  { %v377_v32 = vunpack.c.l.bf16 %v374_v31  ;;  %v378_v33 = vunpack.c.h.bf16 %v374_v31 }
 0x13d   :  { %v941_v36 = vpop.eup %940  ;;  %v383_v37 = vmul.f32 1.442695, %v377_v32  ;;  %v385_v38 = vmul.f32 1.442695, %v378_v33  ;;  %v352_v22 = vpop.f32.mrf.mxu2 }
 0x13e   :  { %v943_v39 = vpop.eup %942  ;;  %v366_v23 = vpop.f32.mrf.mxu3 }
 0x13f   :  { %v387_v40 = vpack.c.bf16 %v943_v39, %v941_v36  ;;  %944 = vpow2.f32 %v383_v37  ;;  %v372_v32 = vpack.c.bf16 %v366_v23, %v352_v22  ;;  %v434_v36 = vunpack.c.h.bf16 %v371_v29 }
 0x140   :  { %946 = vpow2.f32 %v385_v38 }
 0x141   :  { %v389_v43 = vunpack.c.l.bf16 %v387_v40  ;;  %v390_v44 = vunpack.c.h.bf16 %v387_v40  ;;  %v435_v39 = vunpack.c.l.bf16 %v372_v32  ;;  %v436_v40 = vunpack.c.h.bf16 %v372_v32 }
 0x143   :  { %v393_v45 = vadd.f32 1.0, %v389_v43  ;;  %v394_v46 = vadd.f32 1.0, %v390_v44 }
 0x145   :  { %v945_v49 = vpop.eup %944  ;;  %v397_v50 = vpack.c.bf16 %v394_v46, %v393_v45 }
 0x146   :  { %v947_v51 = vpop.eup %946 }
 0x147   :  { %v401_v52 = vunpack.c.h.bf16 %v397_v50  ;;  %v402_v53 = vunpack.c.l.bf16 %v397_v50  ;;  %v388_v54 = vpack.c.bf16 %v947_v51, %v945_v49 }
 0x149   :  { %948 = vrcp.f32 %v401_v52  ;;  %v391_v55 = vunpack.c.l.bf16 %v388_v54  ;;  %v392_v56 = vunpack.c.h.bf16 %v388_v54 }
 0x14a   :  { %950 = vrcp.f32 %v402_v53 }
 0x14b   :  { %v395_v57 = vadd.f32 1.0, %v391_v55  ;;  %v396_v58 = vadd.f32 1.0, %v392_v56 }
 0x14d   :  { %v398_v62 = vpack.c.bf16 %v396_v58, %v395_v57 }
 0x14f   :  { %v949_v63 = vpop.eup %948  ;;  %v408_v0 = vunpack.c.h.bf16 %v398_v62  ;;  %v409_v2 = vunpack.c.l.bf16 %v398_v62 }
 0x150   :  { %v951_v5 = vpop.eup %950  ;;  %v404_v7 = vmul.f32 %v949_v63, %v399_v60 }
 0x151   :  { %v406_v8 = vmul.f32 %v951_v5, %v400_v61  ;;  %952 = vrcp.f32 %v408_v0 }
 0x152   :  { %954 = vrcp.f32 %v409_v2 }
 0x153   :  { %v407_v11 = vpack.c.bf16 %v404_v7, %v406_v8 }
 0x155   :  { %v419_v12 = vunpack.c.l.bf16 %v407_v11  ;;  %v420_v13 = vunpack.c.h.bf16 %v407_v11 }
 0x157   :  { %v953_v14 = vpop.eup %952  ;;  %v423_v18 = vmul.f32 %v419_v12, %v415_v15  ;;  %v424_v6 = vmul.f32 %v420_v13, %v416_v16 }
 0x158   :  { %v955_v1 = vpop.eup %954  ;;  %v411_v17 = vmul.f32 %v953_v14, %v399_v60 }
 0x159   :  { %v413_v19 = vmul.f32 %v955_v1, %v400_v61  ;;  %v427_v24 = vpack.c.bf16 %v424_v6, %v423_v18 }
 0x15b   :  { %v414_v20 = vpack.c.bf16 %v411_v17, %v413_v19  ;;  %v429_v3 = vunpack.c.l.bf16 %v427_v24  ;;  %v430_v33 = vunpack.c.h.bf16 %v427_v24 }
 0x15d   :  { %v421_v26 = vunpack.c.l.bf16 %v414_v20  ;;  %v422_v27 = vunpack.c.h.bf16 %v414_v20  ;;  %v437_v41 = vmul.f32 %v433_v35, %v429_v3  ;;  %v438_v42 = vmul.f32 %v434_v36, %v430_v33 }
 0x15f   :  { %v425_v30 = vmul.f32 %v421_v26, %v417_v21  ;;  %v426_v31 = vmul.f32 %v422_v27, %v418_v25 }
 0x161   :  { %v428_v34 = vpack.c.bf16 %v426_v31, %v425_v30 }
 0x163   :  { %v431_v37 = vunpack.c.l.bf16 %v428_v34  ;;  %v432_v38 = vunpack.c.h.bf16 %v428_v34 }
 0x165   :  { %v439_v43 = vmul.f32 %v435_v39, %v431_v37  ;;  %v440_v44 = vmul.f32 %v436_v40, %v432_v38 }
 0x167   :  { %v441_v28 = vpack.c.bf16 %v439_v43, %v437_v41  ;;  %v442_v45 = vpack.c.bf16 %v440_v44, %v438_v42 }
 0x169   :  { %581 = vmatmul.bf16.vlgmr.msrb.gmra.mxu0 %v441_v28  ;;  %595 = vmatmul.bf16.vlgmr.msrb.gmra.mxu1 %v442_v45 }
 0x1e6   :  { %v582_v46 = vpop.f32.mrf.mxu0  ;;  %v596_v47 = vpop.f32.mrf.mxu1 }
 0x1e7   :  { %v597_v48 = vadd.f32 %v596_v47, %v582_v46 }
 0x1e9   :  { %v611_v49 = vmul.f32 %v597_v48, %v597_v48 }
 0x1eb   :  { %613 = vadd.xlane.f32.xlu1 %v611_v49 }
 0x1ee   :  { %v584_v50 = vpop.f32.mrf.mxu0  ;;  %v598_v51 = vpop.f32.mrf.mxu1 }
 0x1ef   :  { %v599_v52 = vadd.f32 %v598_v51, %v584_v50 }
 0x1f1   :  { %v612_v53 = vmul.f32 %v599_v52, %v599_v52 }
 0x1f3   :  { %615 = vadd.xlane.f32.xlu1 %v612_v53 }
 0x25e   :  { %v614_v54 = vpop.xlane.xlu1 %613 }
 0x25f   :  { %v624_v55 = vmul.f32 %v614_v54, %v1074_v4 }
 0x261   :  { %v626_v56 = vadd.f32 1e-06, %v624_v55 }
 0x263   :  { %956 = vrsqrt.f32 %v626_v56  ;;  %vm634_vm8 = vweird.f32 %v626_v56 }
 0x266   :  { %v616_v57 = vpop.xlane.xlu1 %615 }
 0x267   :  { %v625_v58 = vmul.f32 %v616_v57, %v1074_v4  ;;  %v933_v4 = vld [vmem:[%s1103_s2] ss:$0 sm:$0xff] }
 0x269   :  { %v957_v59 = vpop.eup %956  ;;  %v627_v60 = vadd.f32 1e-06, %v625_v58 }
 0x26a   :  { %v629_v61 = vmul.f32 %v957_v59, %v626_v56  ;;  %vm635_vm7 = vweird.f32 %v957_v59 }
 0x26b   :  { %958 = vrsqrt.f32 %v627_v60  ;;  %vm636_vm9 = vmor %vm634_vm8, %vm635_vm7  ;;  %vm644_vm11 = vweird.f32 %v627_v60 }
 0x26c   :  { %v630_v62 = vmul.f32 %v957_v59, %v629_v61 }
 0x26e   :  { %v631_v63 = vmul.f32 0.5, %v630_v62 }
 0x270   :  { %v632_v0 = vsub.f32 1.5, %v631_v63 }
 0x271   :  { %v959_v2 = vpop.eup %958 }
 0x272   :  { %v639_v5 = vmul.f32 %v959_v2, %v627_v60  ;;  %v633_v7 = vmul.f32 %v957_v59, %v632_v0  ;;  %vm645_vm10 = vweird.f32 %v959_v2 }
 0x273   :  { %vm646_vm12 = vmor %vm644_vm11, %vm645_vm10 }
 0x274   :  { %v640_v8 = vmul.f32 %v959_v2, %v639_v5  ;;  %v637_v10 = vsel %vm636_vm9, %v957_v59, %v633_v7 }
 0x275   :  { %v648_v13 = vmul.f32 %v637_v10, %v597_v48 }
 0x276   :  { %v641_v9 = vmul.f32 0.5, %v640_v8 }
 0x277   :  { %v653_v16 = vmul.f32 %v933_v4, %v648_v13 }
 0x278   :  { %v642_v11 = vsub.f32 1.5, %v641_v9 }
 0x27a   :  { %v643_v12 = vmul.f32 %v959_v2, %v642_v11 }
 0x27c   :  { %v647_v14 = vsel %vm646_vm12, %v959_v2, %v643_v12 }
 0x27d   :  { %v649_v15 = vmul.f32 %v647_v14, %v599_v52 }
 0x27f   :  { %v654_v1 = vmul.f32 %v933_v4, %v649_v15 }
 0x281   :  { %v922_v17 = vpack.c.bf16 %v654_v1, %v653_v16 }
 0x283   :  { %923 = vst [vmem:[%s1106_s5] sm:$0xff] %v922_v17  }
 0x284   :  { %663 = vsyncpa [#allocation5], 1 }
 0x285   :  { %664 = vsyncpa [#allocation7], 1 }

</bundles_post_ra>
